<compile_context>
chip_gen: v6e
topology: v6e:2x2x1
jax: 0.10.0
libtpu: 0.0.40
codegen_flags: <defaults>
</compile_context>

<pallas_src>
import jax
import jax.numpy as jnp
from jax.experimental import pallas as pl
from jax.experimental.pallas import tpu as pltpu

# ----------------------------- mini-BERT config ------------------------------
VOCAB = 100
TYPE_VOCAB = 2
MAX_POS = 16
HIDDEN = 32          # stands in for 768 of Bio_ClinicalBERT
N_HEADS = 4
HEAD_DIM = HIDDEN // N_HEADS
FFN = 4 * HIDDEN
N_LAYERS = 2
N_CLASSES = 2
CLS_PAD = 128        # lane-dense padding for the classifier / output store
BATCH = 2
SEQ = 8
BS = BATCH * SEQ
LN_EPS = 1e-12
NEG_BIG = -1e9       # cross-batch mask / padded-class bias


# ------------------------------ fused Pallas kernel --------------------------
def _bert_fused_kernel(h_ref, bias_ref,
                       emb_g_ref, emb_b_ref,
                       wqkv_ref, bqkv_ref, wo_ref, bo_ref,
                       ln1g_ref, ln1b_ref,
                       w1_ref, b1_ref, w2_ref, b2_ref,
                       ln2g_ref, ln2b_ref,
                       pw_ref, pb_ref, cw_ref, cb_ref,
                       out_ref,
                       ctx_ref):
    """Entire BERT-mini forward on VMEM-resident data; single invocation."""

    def ln(x, g, b):  # torch.nn.LayerNorm (biased variance), f32
        mu = jnp.mean(x, axis=-1, keepdims=True)
        var = jnp.mean((x - mu) ** 2, axis=-1, keepdims=True)
        return (x - mu) * jax.lax.rsqrt(var + LN_EPS) * g + b

    def mm(x, w):  # bf16 MXU operands, f32 accumulation (matches amp reference)
        return jnp.dot(x.astype(jnp.bfloat16), w.astype(jnp.bfloat16),
                       preferred_element_type=jnp.float32)

    h = ln(h_ref[...], emb_g_ref[...], emb_b_ref[...])     # (B*S, H) f32
    bias = bias_ref[...]                                    # (B*S, B*S) additive,
                                                            # block-diag + padding

    # NOTE: static unroll is fine for 2 layers; switch to lax.fori_loop /
    # grid axis once N_LAYERS grows (vreg live-range / compile-time pressure).
    for l in range(N_LAYERS):
        # ---- fused QKV projection: one (H, 3H) matmul ----
        qkv = mm(h, wqkv_ref[l]) + bqkv_ref[l]              # (B*S, 3H) f32
        # Q was pre-scaled by 1/sqrt(HEAD_DIM) at pack time.

        def split_heads(x2d):                               # (B*S, H) -> (Nh, B*S, D)
            return jnp.stack(
                [x2d[:, hh * HEAD_DIM:(hh + 1) * HEAD_DIM] for hh in range(N_HEADS)],
                axis=0).astype(jnp.bfloat16)

        qh = split_heads(qkv[:, 0 * HIDDEN:1 * HIDDEN])
        kh = split_heads(qkv[:, 1 * HIDDEN:2 * HIDDEN])
        vh = split_heads(qkv[:, 2 * HIDDEN:3 * HIDDEN])

        # ---- one batched matmul for all heads' scores: (Nh, B*S, B*S) ----
        s = jax.lax.dot_general(qh, kh, (((2,), (2,)), ((0,), (0,))),
                                preferred_element_type=jnp.float32)
        s = s + bias                                        # padding + block-diag mask
        s = s - jnp.max(s, axis=-1, keepdims=True)
        p = jnp.exp(s)
        p = p * pl.reciprocal(jnp.sum(p, axis=-1, keepdims=True), approx=True)

        # ---- one batched matmul for P @ V: (Nh, B*S, D) ----
        ctx = jax.lax.dot_general(p.astype(jnp.bfloat16), vh,
                                  (((2,), (1,)), ((0,), (0,))),
                                  preferred_element_type=jnp.float32)

        # ---- merge heads via VMEM scratch writes (no value concatenates) ----
        for hh in range(N_HEADS):
            ctx_ref[:, hh * HEAD_DIM:(hh + 1) * HEAD_DIM] = ctx[hh]

        # ---- attention output projection + residual + LN1 ----
        attn_out = mm(ctx_ref[...], wo_ref[l]) + bo_ref[l]
        h = ln(h + attn_out, ln1g_ref[l], ln1b_ref[l])

        # ---- FFN + residual + LN2 ----
        # TODO(synk): HF BERT default is exact erf-GELU; tanh approximation used here.
        ff = jax.nn.gelu(mm(h, w1_ref[l]) + b1_ref[l], approximate=True)
        ff = mm(ff, w2_ref[l]) + b2_ref[l]
        h = ln(h + ff, ln2g_ref[l], ln2b_ref[l])

    # ---- pooler + classifier + Softmax(dim=1), computed for ALL rows so the
    #      output store is a lane/sublane-dense (B*S, 128) block; the wrapper
    #      keeps only the CLS rows (::SEQ) and the first N_CLASSES lanes. ----
    pooled = jnp.tanh(mm(h, pw_ref[...]) + pb_ref[...])     # (B*S, H)
    logits = mm(pooled, cw_ref[...]) + cb_ref[...]          # (B*S, 128); pad lanes -1e9
    logits = logits - jnp.max(logits, axis=-1, keepdims=True)
    e = jnp.exp(logits)                                     # pad lanes -> exactly 0
    out_ref[...] = e / jnp.sum(e, axis=-1, keepdims=True)   # exact div: rows sum to 1


# ------------------------------ parameter init -------------------------------
def init_params(key):
    def dense(k, fan_in, fan_out):
        w = jax.random.normal(k, (fan_in, fan_out), jnp.float32) * 0.02
        b = jnp.zeros((fan_out,), jnp.float32)
        return w, b

    keys = iter(jax.random.split(key, 64))
    params = {
        "word_emb": jax.random.normal(next(keys), (VOCAB, HIDDEN), jnp.float32) * 0.02,
        "pos_emb": jax.random.normal(next(keys), (MAX_POS, HIDDEN), jnp.float32) * 0.02,
        "type_emb": jax.random.normal(next(keys), (TYPE_VOCAB, HIDDEN), jnp.float32) * 0.02,
        "emb_ln_g": jnp.ones((HIDDEN,), jnp.float32),
        "emb_ln_b": jnp.zeros((HIDDEN,), jnp.float32),
        "layers": [],
    }
    for _ in range(N_LAYERS):
        wq, bq = dense(next(keys), HIDDEN, HIDDEN)
        wk, bk = dense(next(keys), HIDDEN, HIDDEN)
        wv, bv = dense(next(keys), HIDDEN, HIDDEN)
        wo, bo = dense(next(keys), HIDDEN, HIDDEN)
        w1, b1 = dense(next(keys), HIDDEN, FFN)
        w2, b2 = dense(next(keys), FFN, HIDDEN)
        params["layers"].append({
            "wq": wq, "bq": bq, "wk": wk, "bk": bk, "wv": wv, "bv": bv,
            "wo": wo, "bo": bo,
            "ln1_g": jnp.ones((HIDDEN,), jnp.float32),
            "ln1_b": jnp.zeros((HIDDEN,), jnp.float32),
            "w1": w1, "b1": b1, "w2": w2, "b2": b2,
            "ln2_g": jnp.ones((HIDDEN,), jnp.float32),
            "ln2_b": jnp.zeros((HIDDEN,), jnp.float32),
        })
    params["pooler_w"], params["pooler_b"] = dense(next(keys), HIDDEN, HIDDEN)
    params["cls_w"], params["cls_b"] = dense(next(keys), HIDDEN, N_CLASSES)
    return params


def pack_params(params):
    """Stack per-layer weights, fuse QKV, fold 1/sqrt(D) into W_q, pad the
    classifier to 128 lanes, cast MXU weights to bf16 (biases / LN stay f32)."""
    scale = 1.0 / (HEAD_DIM ** 0.5)
    layers = params["layers"]

    def stack(fn):
        return jnp.stack([fn(lp) for lp in layers], axis=0)

    # lane-dense classifier: zero-padded weight, -1e9-padded bias (pad classes
    # get exp(...) == 0, so the full-128-lane softmax equals the 2-class softmax)
    cls_w_pad = jnp.zeros((HIDDEN, CLS_PAD), jnp.float32)
    cls_w_pad = cls_w_pad.at[:, :N_CLASSES].set(params["cls_w"])
    cls_b_pad = jnp.full((1, CLS_PAD), NEG_BIG, jnp.float32)
    cls_b_pad = cls_b_pad.at[0, :N_CLASSES].set(params["cls_b"])

    return {
        "word_emb": params["word_emb"],
        "pos_emb": params["pos_emb"],
        "type_emb": params["type_emb"],
        "emb_ln_g": params["emb_ln_g"].reshape(1, HIDDEN),
        "emb_ln_b": params["emb_ln_b"].reshape(1, HIDDEN),
        "wqkv": stack(lambda lp: jnp.concatenate(
            [lp["wq"] * scale, lp["wk"], lp["wv"]], axis=1)).astype(jnp.bfloat16),
        "bqkv": stack(lambda lp: jnp.concatenate(
            [lp["bq"] * scale, lp["bk"], lp["bv"]], axis=0).reshape(1, 3 * HIDDEN)),
        "wo": stack(lambda lp: lp["wo"]).astype(jnp.bfloat16),
        "bo": stack(lambda lp: lp["bo"].reshape(1, HIDDEN)),
        "ln1_g": stack(lambda lp: lp["ln1_g"].reshape(1, HIDDEN)),
        "ln1_b": stack(lambda lp: lp["ln1_b"].reshape(1, HIDDEN)),
        "w1": stack(lambda lp: lp["w1"]).astype(jnp.bfloat16),
        "b1": stack(lambda lp: lp["b1"].reshape(1, FFN)),
        "w2": stack(lambda lp: lp["w2"]).astype(jnp.bfloat16),
        "b2": stack(lambda lp: lp["b2"].reshape(1, HIDDEN)),
        "ln2_g": stack(lambda lp: lp["ln2_g"].reshape(1, HIDDEN)),
        "ln2_b": stack(lambda lp: lp["ln2_b"].reshape(1, HIDDEN)),
        "pooler_w": params["pooler_w"].astype(jnp.bfloat16),
        "pooler_b": params["pooler_b"].reshape(1, HIDDEN),
        "cls_w": cls_w_pad.astype(jnp.bfloat16),
        "cls_b": cls_b_pad,
    }


# ------------------------------- forward pass --------------------------------
def sentence_pair_classifier_forward(packed, input_ids, attn_masks, token_type_ids):
    B, S = input_ids.shape

    # --- BERT embeddings: table gathers (plain-JAX glue) ---
    pos_ids = jnp.arange(S, dtype=jnp.int32)
    h = (jnp.take(packed["word_emb"], input_ids, axis=0)
         + jnp.take(packed["pos_emb"], pos_ids, axis=0)[None, :, :]
         + jnp.take(packed["type_emb"], token_type_ids, axis=0))
    h = h.reshape(B * S, HIDDEN).astype(jnp.float32)

    # --- combined additive attention bias, computed ONCE (hoisted out of the
    #     kernel's layer/head structure): key-padding (-1e4) + block-diagonal
    #     batch mask (-1e9) over the full (B*S, B*S) score matrix ---
    pad_add = ((1.0 - attn_masks.astype(jnp.float32)) * -10000.0).reshape(B * S)
    bid = jnp.arange(B * S, dtype=jnp.int32) // S
    same_batch = bid[:, None] == bid[None, :]
    attn_bias = jnp.where(same_batch, pad_add[None, :],
                          jnp.float32(NEG_BIG)).astype(jnp.float32)     # (B*S, B*S)

    args = (h, attn_bias,
            packed["emb_ln_g"], packed["emb_ln_b"],
            packed["wqkv"], packed["bqkv"], packed["wo"], packed["bo"],
            packed["ln1_g"], packed["ln1_b"],
            packed["w1"], packed["b1"], packed["w2"], packed["b2"],
            packed["ln2_g"], packed["ln2_b"],
            packed["pooler_w"], packed["pooler_b"],
            packed["cls_w"], packed["cls_b"])

    # --- one fused no-grid pallas_call for the whole model (all VMEM-resident) ---
    probs_full = pl.pallas_call(
        _bert_fused_kernel,
        out_shape=jax.ShapeDtypeStruct((B * S, CLS_PAD), jnp.float32),
        scratch_shapes=[pltpu.VMEM((B * S, HIDDEN), jnp.float32)],
    )(*args)

    # keep CLS rows (token 0 of each sequence) and the real classes
    probs = probs_full.reshape(B, S, CLS_PAD)[:, 0, :N_CLASSES]
    return probs


# ----------------------------------- main -------------------------------------
if __name__ == "__main__":
    root = jax.random.PRNGKey(0)
    pkey, dkey = jax.random.split(root)

    params = init_params(pkey)
    packed = pack_params(params)

    input_ids = jax.random.randint(jax.random.fold_in(dkey, 0),
                                   (BATCH, SEQ), 0, VOCAB, dtype=jnp.int32)
    attn_masks = jnp.ones((BATCH, SEQ), jnp.int32)
    attn_masks = attn_masks.at[1, -2:].set(0)          # some padding on example 1
    token_type_ids = jnp.concatenate(
        [jnp.zeros((BATCH, SEQ // 2), jnp.int32),
         jnp.ones((BATCH, SEQ // 2), jnp.int32)], axis=1)

    fwd = jax.jit(sentence_pair_classifier_forward)
    probs = fwd(packed, input_ids, attn_masks, token_type_ids)
    probs = jax.block_until_ready(probs)

    assert probs.shape == (BATCH, N_CLASSES)
    assert bool(jnp.all(jnp.isfinite(probs)))
    assert bool(jnp.allclose(jnp.sum(probs, axis=1), 1.0, atol=1e-5))
    print("KERNEL_OK")
</pallas_src>

<mosaic_0001>
module attributes {stable_mosaic.version = 11 : i64} {
  func.func @_bert_fused_kernel(%arg0: memref<16x32xf32, #tpu.memory_space<vmem>>, %arg1: memref<16x16xf32, #tpu.memory_space<vmem>>, %arg2: memref<1x32xf32, #tpu.memory_space<vmem>>, %arg3: memref<1x32xf32, #tpu.memory_space<vmem>>, %arg4: memref<2x32x96xbf16, #tpu.memory_space<vmem>>, %arg5: memref<2x1x96xf32, #tpu.memory_space<vmem>>, %arg6: memref<2x32x32xbf16, #tpu.memory_space<vmem>>, %arg7: memref<2x1x32xf32, #tpu.memory_space<vmem>>, %arg8: memref<2x1x32xf32, #tpu.memory_space<vmem>>, %arg9: memref<2x1x32xf32, #tpu.memory_space<vmem>>, %arg10: memref<2x32x128xbf16, #tpu.memory_space<vmem>>, %arg11: memref<2x1x128xf32, #tpu.memory_space<vmem>>, %arg12: memref<2x128x32xbf16, #tpu.memory_space<vmem>>, %arg13: memref<2x1x32xf32, #tpu.memory_space<vmem>>, %arg14: memref<2x1x32xf32, #tpu.memory_space<vmem>>, %arg15: memref<2x1x32xf32, #tpu.memory_space<vmem>>, %arg16: memref<32x32xbf16, #tpu.memory_space<vmem>>, %arg17: memref<1x32xf32, #tpu.memory_space<vmem>>, %arg18: memref<32x128xbf16, #tpu.memory_space<vmem>>, %arg19: memref<1x128xf32, #tpu.memory_space<vmem>>, %arg20: memref<16x128xf32, #tpu.memory_space<vmem>>, %arg21: memref<16x32xf32, #tpu.memory_space<vmem>>) attributes {dimension_semantics = [], scalar_prefetch = 0 : i64, scratch_operands = 1 : i64, tpu.core_type = #tpu.core_type<tc>} {
    %c0 = arith.constant 0 : index
    %c0_0 = arith.constant 0 : index
    %0 = vector.load %arg0[%c0, %c0_0] : memref<16x32xf32, #tpu.memory_space<vmem>>, vector<16x32xf32>
    %c0_1 = arith.constant 0 : index
    %c0_2 = arith.constant 0 : index
    %1 = vector.load %arg2[%c0_1, %c0_2] : memref<1x32xf32, #tpu.memory_space<vmem>>, vector<1x32xf32>
    %c0_3 = arith.constant 0 : index
    %c0_4 = arith.constant 0 : index
    %2 = vector.load %arg3[%c0_3, %c0_4] : memref<1x32xf32, #tpu.memory_space<vmem>>, vector<1x32xf32>
    %cst = arith.constant dense<0.000000e+00> : vector<16xf32>
    %3 = vector.multi_reduction <add>, %0, %cst [1] : vector<16x32xf32> to vector<16xf32>
    %4 = vector.shape_cast %3 : vector<16xf32> to vector<16x1xf32>
    %cst_5 = arith.constant 3.200000e+01 : f32
    %5 = vector.broadcast %cst_5 : f32 to vector<16x1xf32>
    %6 = arith.divf %4, %5 : vector<16x1xf32>
    %7 = vector.broadcast %6 : vector<16x1xf32> to vector<16x32xf32>
    %8 = arith.subf %0, %7 : vector<16x32xf32>
    %9 = arith.mulf %8, %8 : vector<16x32xf32>
    %cst_6 = arith.constant dense<0.000000e+00> : vector<16xf32>
    %10 = vector.multi_reduction <add>, %9, %cst_6 [1] : vector<16x32xf32> to vector<16xf32>
    %11 = vector.shape_cast %10 : vector<16xf32> to vector<16x1xf32>
    %cst_7 = arith.constant 3.200000e+01 : f32
    %12 = vector.broadcast %cst_7 : f32 to vector<16x1xf32>
    %13 = arith.divf %11, %12 : vector<16x1xf32>
    %14 = vector.broadcast %6 : vector<16x1xf32> to vector<16x32xf32>
    %15 = arith.subf %0, %14 : vector<16x32xf32>
    %cst_8 = arith.constant 9.99999996E-13 : f32
    %16 = vector.broadcast %cst_8 : f32 to vector<16x1xf32>
    %17 = arith.addf %13, %16 : vector<16x1xf32>
    %18 = math.rsqrt %17 : vector<16x1xf32>
    %19 = vector.broadcast %18 : vector<16x1xf32> to vector<16x32xf32>
    %20 = arith.mulf %15, %19 : vector<16x32xf32>
    %21 = vector.broadcast %1 : vector<1x32xf32> to vector<16x32xf32>
    %22 = arith.mulf %20, %21 : vector<16x32xf32>
    %23 = vector.broadcast %2 : vector<1x32xf32> to vector<16x32xf32>
    %24 = arith.addf %22, %23 : vector<16x32xf32>
    %c0_9 = arith.constant 0 : index
    %c0_10 = arith.constant 0 : index
    %25 = vector.load %arg1[%c0_9, %c0_10] : memref<16x16xf32, #tpu.memory_space<vmem>>, vector<16x16xf32>
    %c0_11 = arith.constant 0 : index
    %c0_12 = arith.constant 0 : index
    %c0_13 = arith.constant 0 : index
    %26 = vector.load %arg4[%c0_11, %c0_12, %c0_13] : memref<2x32x96xbf16, #tpu.memory_space<vmem>>, vector<1x32x96xbf16>
    %27 = vector.shape_cast %26 : vector<1x32x96xbf16> to vector<32x96xbf16>
    %28 = arith.truncf %24 : vector<16x32xf32> to vector<16x32xbf16>
    %cst_14 = arith.constant dense<0.000000e+00> : vector<16x96xf32>
    %29 = tpu.matmul %28, %27, %cst_14 {dimension_numbers = #tpu.dot_dimension_numbers<[1], [0], [0], [1], [0, 0, 1, 1], [], []>} : vector<16x32xbf16>, vector<32x96xbf16>, vector<16x96xf32> -> vector<16x96xf32>
    %c0_15 = arith.constant 0 : index
    %c0_16 = arith.constant 0 : index
    %c0_17 = arith.constant 0 : index
    %30 = vector.load %arg5[%c0_15, %c0_16, %c0_17] : memref<2x1x96xf32, #tpu.memory_space<vmem>>, vector<1x1x96xf32>
    %31 = vector.shape_cast %30 : vector<1x1x96xf32> to vector<1x96xf32>
    %32 = vector.broadcast %31 : vector<1x96xf32> to vector<16x96xf32>
    %33 = arith.addf %29, %32 : vector<16x96xf32>
    %34 = vector.extract_strided_slice %33 {offsets = [0, 0], sizes = [16, 32], strides = [1, 1]} : vector<16x96xf32> to vector<16x32xf32>
    %35 = vector.extract_strided_slice %34 {offsets = [0, 0], sizes = [16, 8], strides = [1, 1]} : vector<16x32xf32> to vector<16x8xf32>
    %36 = vector.extract_strided_slice %34 {offsets = [0, 8], sizes = [16, 8], strides = [1, 1]} : vector<16x32xf32> to vector<16x8xf32>
    %37 = vector.extract_strided_slice %34 {offsets = [0, 16], sizes = [16, 8], strides = [1, 1]} : vector<16x32xf32> to vector<16x8xf32>
    %38 = vector.extract_strided_slice %34 {offsets = [0, 24], sizes = [16, 8], strides = [1, 1]} : vector<16x32xf32> to vector<16x8xf32>
    %39 = vector.shape_cast %35 : vector<16x8xf32> to vector<1x16x8xf32>
    %40 = vector.shape_cast %36 : vector<16x8xf32> to vector<1x16x8xf32>
    %41 = vector.shape_cast %37 : vector<16x8xf32> to vector<1x16x8xf32>
    %42 = vector.shape_cast %38 : vector<16x8xf32> to vector<1x16x8xf32>
    %43 = tpu.concatenate %39, %40, %41, %42 in 0 : vector<1x16x8xf32>, vector<1x16x8xf32>, vector<1x16x8xf32>, vector<1x16x8xf32> -> vector<4x16x8xf32>
    %44 = arith.truncf %43 : vector<4x16x8xf32> to vector<4x16x8xbf16>
    %45 = vector.extract_strided_slice %33 {offsets = [0, 32], sizes = [16, 32], strides = [1, 1]} : vector<16x96xf32> to vector<16x32xf32>
    %46 = vector.extract_strided_slice %45 {offsets = [0, 0], sizes = [16, 8], strides = [1, 1]} : vector<16x32xf32> to vector<16x8xf32>
    %47 = vector.extract_strided_slice %45 {offsets = [0, 8], sizes = [16, 8], strides = [1, 1]} : vector<16x32xf32> to vector<16x8xf32>
    %48 = vector.extract_strided_slice %45 {offsets = [0, 16], sizes = [16, 8], strides = [1, 1]} : vector<16x32xf32> to vector<16x8xf32>
    %49 = vector.extract_strided_slice %45 {offsets = [0, 24], sizes = [16, 8], strides = [1, 1]} : vector<16x32xf32> to vector<16x8xf32>
    %50 = vector.shape_cast %46 : vector<16x8xf32> to vector<1x16x8xf32>
    %51 = vector.shape_cast %47 : vector<16x8xf32> to vector<1x16x8xf32>
    %52 = vector.shape_cast %48 : vector<16x8xf32> to vector<1x16x8xf32>
    %53 = vector.shape_cast %49 : vector<16x8xf32> to vector<1x16x8xf32>
    %54 = tpu.concatenate %50, %51, %52, %53 in 0 : vector<1x16x8xf32>, vector<1x16x8xf32>, vector<1x16x8xf32>, vector<1x16x8xf32> -> vector<4x16x8xf32>
    %55 = arith.truncf %54 : vector<4x16x8xf32> to vector<4x16x8xbf16>
    %56 = vector.extract_strided_slice %33 {offsets = [0, 64], sizes = [16, 32], strides = [1, 1]} : vector<16x96xf32> to vector<16x32xf32>
    %57 = vector.extract_strided_slice %56 {offsets = [0, 0], sizes = [16, 8], strides = [1, 1]} : vector<16x32xf32> to vector<16x8xf32>
    %58 = vector.extract_strided_slice %56 {offsets = [0, 8], sizes = [16, 8], strides = [1, 1]} : vector<16x32xf32> to vector<16x8xf32>
    %59 = vector.extract_strided_slice %56 {offsets = [0, 16], sizes = [16, 8], strides = [1, 1]} : vector<16x32xf32> to vector<16x8xf32>
    %60 = vector.extract_strided_slice %56 {offsets = [0, 24], sizes = [16, 8], strides = [1, 1]} : vector<16x32xf32> to vector<16x8xf32>
    %61 = vector.shape_cast %57 : vector<16x8xf32> to vector<1x16x8xf32>
    %62 = vector.shape_cast %58 : vector<16x8xf32> to vector<1x16x8xf32>
    %63 = vector.shape_cast %59 : vector<16x8xf32> to vector<1x16x8xf32>
    %64 = vector.shape_cast %60 : vector<16x8xf32> to vector<1x16x8xf32>
    %65 = tpu.concatenate %61, %62, %63, %64 in 0 : vector<1x16x8xf32>, vector<1x16x8xf32>, vector<1x16x8xf32>, vector<1x16x8xf32> -> vector<4x16x8xf32>
    %66 = arith.truncf %65 : vector<4x16x8xf32> to vector<4x16x8xbf16>
    %cst_18 = arith.constant dense<0.000000e+00> : vector<4x16x16xf32>
    %67 = tpu.matmul %44, %55, %cst_18 {dimension_numbers = #tpu.dot_dimension_numbers<[2], [2], [1], [1], [0, 0, 0, 1, 1, 1], [0], [0]>} : vector<4x16x8xbf16>, vector<4x16x8xbf16>, vector<4x16x16xf32> -> vector<4x16x16xf32>
    %68 = vector.shape_cast %25 : vector<16x16xf32> to vector<1x16x16xf32>
    %69 = vector.broadcast %68 : vector<1x16x16xf32> to vector<4x16x16xf32>
    %70 = arith.addf %67, %69 : vector<4x16x16xf32>
    %cst_19 = arith.constant dense<0xFF800000> : vector<4x16xf32>
    %71 = vector.multi_reduction <maximumf>, %70, %cst_19 [2] : vector<4x16x16xf32> to vector<4x16xf32>
    %72 = vector.shape_cast %71 : vector<4x16xf32> to vector<4x16x1xf32>
    %73 = vector.broadcast %72 : vector<4x16x1xf32> to vector<4x16x16xf32>
    %74 = arith.subf %70, %73 : vector<4x16x16xf32>
    %75 = math.exp %74 : vector<4x16x16xf32>
    %cst_20 = arith.constant dense<0.000000e+00> : vector<4x16xf32>
    %76 = vector.multi_reduction <add>, %75, %cst_20 [2] : vector<4x16x16xf32> to vector<4x16xf32>
    %77 = vector.shape_cast %76 : vector<4x16xf32> to vector<4x16x1xf32>
    %78 = tpu.reciprocal %77 {approx = true} : vector<4x16x1xf32> -> vector<4x16x1xf32>
    %79 = vector.broadcast %78 : vector<4x16x1xf32> to vector<4x16x16xf32>
    %80 = arith.mulf %75, %79 : vector<4x16x16xf32>
    %81 = arith.truncf %80 : vector<4x16x16xf32> to vector<4x16x16xbf16>
    %cst_21 = arith.constant dense<0.000000e+00> : vector<4x16x8xf32>
    %82 = tpu.matmul %81, %66, %cst_21 {dimension_numbers = #tpu.dot_dimension_numbers<[2], [1], [1], [2], [0, 0, 0, 1, 1, 2], [0], [0]>} : vector<4x16x16xbf16>, vector<4x16x8xbf16>, vector<4x16x8xf32> -> vector<4x16x8xf32>
    %83 = vector.extract_strided_slice %82 {offsets = [0, 0, 0], sizes = [1, 16, 8], strides = [1, 1, 1]} : vector<4x16x8xf32> to vector<1x16x8xf32>
    %84 = vector.shape_cast %83 : vector<1x16x8xf32> to vector<16x8xf32>
    %c0_22 = arith.constant 0 : index
    %c0_23 = arith.constant 0 : index
    %85 = vector.load %arg21[%c0_22, %c0_23] : memref<16x32xf32, #tpu.memory_space<vmem>>, vector<16x8xf32>
    tpu.vector_store %arg21[%c0_22, %c0_23], %84 {strides = array<i32>} : memref<16x32xf32, #tpu.memory_space<vmem>>, vector<16x8xf32>,
    %86 = vector.extract_strided_slice %82 {offsets = [1, 0, 0], sizes = [1, 16, 8], strides = [1, 1, 1]} : vector<4x16x8xf32> to vector<1x16x8xf32>
    %87 = vector.shape_cast %86 : vector<1x16x8xf32> to vector<16x8xf32>
    %c0_24 = arith.constant 0 : index
    %c8 = arith.constant 8 : index
    %88 = vector.load %arg21[%c0_24, %c8] : memref<16x32xf32, #tpu.memory_space<vmem>>, vector<16x8xf32>
    tpu.vector_store %arg21[%c0_24, %c8], %87 {strides = array<i32>} : memref<16x32xf32, #tpu.memory_space<vmem>>, vector<16x8xf32>,
    %89 = vector.extract_strided_slice %82 {offsets = [2, 0, 0], sizes = [1, 16, 8], strides = [1, 1, 1]} : vector<4x16x8xf32> to vector<1x16x8xf32>
    %90 = vector.shape_cast %89 : vector<1x16x8xf32> to vector<16x8xf32>
    %c0_25 = arith.constant 0 : index
    %c16 = arith.constant 16 : index
    %91 = vector.load %arg21[%c0_25, %c16] : memref<16x32xf32, #tpu.memory_space<vmem>>, vector<16x8xf32>
    tpu.vector_store %arg21[%c0_25, %c16], %90 {strides = array<i32>} : memref<16x32xf32, #tpu.memory_space<vmem>>, vector<16x8xf32>,
    %92 = vector.extract_strided_slice %82 {offsets = [3, 0, 0], sizes = [1, 16, 8], strides = [1, 1, 1]} : vector<4x16x8xf32> to vector<1x16x8xf32>
    %93 = vector.shape_cast %92 : vector<1x16x8xf32> to vector<16x8xf32>
    %c0_26 = arith.constant 0 : index
    %c24 = arith.constant 24 : index
    %94 = vector.load %arg21[%c0_26, %c24] : memref<16x32xf32, #tpu.memory_space<vmem>>, vector<16x8xf32>
    tpu.vector_store %arg21[%c0_26, %c24], %93 {strides = array<i32>} : memref<16x32xf32, #tpu.memory_space<vmem>>, vector<16x8xf32>,
    %c0_27 = arith.constant 0 : index
    %c0_28 = arith.constant 0 : index
    %95 = vector.load %arg21[%c0_27, %c0_28] : memref<16x32xf32, #tpu.memory_space<vmem>>, vector<16x32xf32>
    %c0_29 = arith.constant 0 : index
    %c0_30 = arith.constant 0 : index
    %c0_31 = arith.constant 0 : index
    %96 = vector.load %arg6[%c0_29, %c0_30, %c0_31] : memref<2x32x32xbf16, #tpu.memory_space<vmem>>, vector<1x32x32xbf16>
    %97 = vector.shape_cast %96 : vector<1x32x32xbf16> to vector<32x32xbf16>
    %98 = arith.truncf %95 : vector<16x32xf32> to vector<16x32xbf16>
    %cst_32 = arith.constant dense<0.000000e+00> : vector<16x32xf32>
    %99 = tpu.matmul %98, %97, %cst_32 {dimension_numbers = #tpu.dot_dimension_numbers<[1], [0], [0], [1], [0, 0, 1, 1], [], []>} : vector<16x32xbf16>, vector<32x32xbf16>, vector<16x32xf32> -> vector<16x32xf32>
    %c0_33 = arith.constant 0 : index
    %c0_34 = arith.constant 0 : index
    %c0_35 = arith.constant 0 : index
    %100 = vector.load %arg7[%c0_33, %c0_34, %c0_35] : memref<2x1x32xf32, #tpu.memory_space<vmem>>, vector<1x1x32xf32>
    %101 = vector.shape_cast %100 : vector<1x1x32xf32> to vector<1x32xf32>
    %102 = vector.broadcast %101 : vector<1x32xf32> to vector<16x32xf32>
    %103 = arith.addf %99, %102 : vector<16x32xf32>
    %104 = arith.addf %24, %103 : vector<16x32xf32>
    %c0_36 = arith.constant 0 : index
    %c0_37 = arith.constant 0 : index
    %c0_38 = arith.constant 0 : index
    %105 = vector.load %arg8[%c0_36, %c0_37, %c0_38] : memref<2x1x32xf32, #tpu.memory_space<vmem>>, vector<1x1x32xf32>
    %106 = vector.shape_cast %105 : vector<1x1x32xf32> to vector<1x32xf32>
    %c0_39 = arith.constant 0 : index
    %c0_40 = arith.constant 0 : index
    %c0_41 = arith.constant 0 : index
    %107 = vector.load %arg9[%c0_39, %c0_40, %c0_41] : memref<2x1x32xf32, #tpu.memory_space<vmem>>, vector<1x1x32xf32>
    %108 = vector.shape_cast %107 : vector<1x1x32xf32> to vector<1x32xf32>
    %cst_42 = arith.constant dense<0.000000e+00> : vector<16xf32>
    %109 = vector.multi_reduction <add>, %104, %cst_42 [1] : vector<16x32xf32> to vector<16xf32>
    %110 = vector.shape_cast %109 : vector<16xf32> to vector<16x1xf32>
    %cst_43 = arith.constant 3.200000e+01 : f32
    %111 = vector.broadcast %cst_43 : f32 to vector<16x1xf32>
    %112 = arith.divf %110, %111 : vector<16x1xf32>
    %113 = vector.broadcast %112 : vector<16x1xf32> to vector<16x32xf32>
    %114 = arith.subf %104, %113 : vector<16x32xf32>
    %115 = arith.mulf %114, %114 : vector<16x32xf32>
    %cst_44 = arith.constant dense<0.000000e+00> : vector<16xf32>
    %116 = vector.multi_reduction <add>, %115, %cst_44 [1] : vector<16x32xf32> to vector<16xf32>
    %117 = vector.shape_cast %116 : vector<16xf32> to vector<16x1xf32>
    %cst_45 = arith.constant 3.200000e+01 : f32
    %118 = vector.broadcast %cst_45 : f32 to vector<16x1xf32>
    %119 = arith.divf %117, %118 : vector<16x1xf32>
    %120 = vector.broadcast %112 : vector<16x1xf32> to vector<16x32xf32>
    %121 = arith.subf %104, %120 : vector<16x32xf32>
    %cst_46 = arith.constant 9.99999996E-13 : f32
    %122 = vector.broadcast %cst_46 : f32 to vector<16x1xf32>
    %123 = arith.addf %119, %122 : vector<16x1xf32>
    %124 = math.rsqrt %123 : vector<16x1xf32>
    %125 = vector.broadcast %124 : vector<16x1xf32> to vector<16x32xf32>
    %126 = arith.mulf %121, %125 : vector<16x32xf32>
    %127 = vector.broadcast %106 : vector<1x32xf32> to vector<16x32xf32>
    %128 = arith.mulf %126, %127 : vector<16x32xf32>
    %129 = vector.broadcast %108 : vector<1x32xf32> to vector<16x32xf32>
    %130 = arith.addf %128, %129 : vector<16x32xf32>
    %c0_47 = arith.constant 0 : index
    %c0_48 = arith.constant 0 : index
    %c0_49 = arith.constant 0 : index
    %131 = vector.load %arg10[%c0_47, %c0_48, %c0_49] : memref<2x32x128xbf16, #tpu.memory_space<vmem>>, vector<1x32x128xbf16>
    %132 = vector.shape_cast %131 : vector<1x32x128xbf16> to vector<32x128xbf16>
    %133 = arith.truncf %130 : vector<16x32xf32> to vector<16x32xbf16>
    %cst_50 = arith.constant dense<0.000000e+00> : vector<16x128xf32>
    %134 = tpu.matmul %133, %132, %cst_50 {dimension_numbers = #tpu.dot_dimension_numbers<[1], [0], [0], [1], [0, 0, 1, 1], [], []>} : vector<16x32xbf16>, vector<32x128xbf16>, vector<16x128xf32> -> vector<16x128xf32>
    %c0_51 = arith.constant 0 : index
    %c0_52 = arith.constant 0 : index
    %c0_53 = arith.constant 0 : index
    %135 = vector.load %arg11[%c0_51, %c0_52, %c0_53] : memref<2x1x128xf32, #tpu.memory_space<vmem>>, vector<1x1x128xf32>
    %136 = vector.shape_cast %135 : vector<1x1x128xf32> to vector<1x128xf32>
    %137 = vector.broadcast %136 : vector<1x128xf32> to vector<16x128xf32>
    %138 = arith.addf %134, %137 : vector<16x128xf32>
    %139 = arith.mulf %138, %138 : vector<16x128xf32>
    %140 = arith.mulf %138, %139 : vector<16x128xf32>
    %cst_54 = arith.constant 4.471500e-02 : f32
    %141 = vector.broadcast %cst_54 : f32 to vector<16x128xf32>
    %142 = arith.mulf %141, %140 : vector<16x128xf32>
    %143 = arith.addf %138, %142 : vector<16x128xf32>
    %cst_55 = arith.constant 0.797884583 : f32
    %144 = vector.broadcast %cst_55 : f32 to vector<16x128xf32>
    %145 = arith.mulf %144, %143 : vector<16x128xf32>
    %146 = math.tanh %145 : vector<16x128xf32>
    %cst_56 = arith.constant 1.000000e+00 : f32
    %147 = vector.broadcast %cst_56 : f32 to vector<16x128xf32>
    %148 = arith.addf %147, %146 : vector<16x128xf32>
    %cst_57 = arith.constant 5.000000e-01 : f32
    %149 = vector.broadcast %cst_57 : f32 to vector<16x128xf32>
    %150 = arith.mulf %149, %148 : vector<16x128xf32>
    %151 = arith.mulf %138, %150 : vector<16x128xf32>
    %c0_58 = arith.constant 0 : index
    %c0_59 = arith.constant 0 : index
    %c0_60 = arith.constant 0 : index
    %152 = vector.load %arg12[%c0_58, %c0_59, %c0_60] : memref<2x128x32xbf16, #tpu.memory_space<vmem>>, vector<1x128x32xbf16>
    %153 = vector.shape_cast %152 : vector<1x128x32xbf16> to vector<128x32xbf16>
    %154 = arith.truncf %151 : vector<16x128xf32> to vector<16x128xbf16>
    %cst_61 = arith.constant dense<0.000000e+00> : vector<16x32xf32>
    %155 = tpu.matmul %154, %153, %cst_61 {dimension_numbers = #tpu.dot_dimension_numbers<[1], [0], [0], [1], [0, 0, 1, 1], [], []>} : vector<16x128xbf16>, vector<128x32xbf16>, vector<16x32xf32> -> vector<16x32xf32>
    %c0_62 = arith.constant 0 : index
    %c0_63 = arith.constant 0 : index
    %c0_64 = arith.constant 0 : index
    %156 = vector.load %arg13[%c0_62, %c0_63, %c0_64] : memref<2x1x32xf32, #tpu.memory_space<vmem>>, vector<1x1x32xf32>
    %157 = vector.shape_cast %156 : vector<1x1x32xf32> to vector<1x32xf32>
    %158 = vector.broadcast %157 : vector<1x32xf32> to vector<16x32xf32>
    %159 = arith.addf %155, %158 : vector<16x32xf32>
    %160 = arith.addf %130, %159 : vector<16x32xf32>
    %c0_65 = arith.constant 0 : index
    %c0_66 = arith.constant 0 : index
    %c0_67 = arith.constant 0 : index
    %161 = vector.load %arg14[%c0_65, %c0_66, %c0_67] : memref<2x1x32xf32, #tpu.memory_space<vmem>>, vector<1x1x32xf32>
    %162 = vector.shape_cast %161 : vector<1x1x32xf32> to vector<1x32xf32>
    %c0_68 = arith.constant 0 : index
    %c0_69 = arith.constant 0 : index
    %c0_70 = arith.constant 0 : index
    %163 = vector.load %arg15[%c0_68, %c0_69, %c0_70] : memref<2x1x32xf32, #tpu.memory_space<vmem>>, vector<1x1x32xf32>
    %164 = vector.shape_cast %163 : vector<1x1x32xf32> to vector<1x32xf32>
    %cst_71 = arith.constant dense<0.000000e+00> : vector<16xf32>
    %165 = vector.multi_reduction <add>, %160, %cst_71 [1] : vector<16x32xf32> to vector<16xf32>
    %166 = vector.shape_cast %165 : vector<16xf32> to vector<16x1xf32>
    %cst_72 = arith.constant 3.200000e+01 : f32
    %167 = vector.broadcast %cst_72 : f32 to vector<16x1xf32>
    %168 = arith.divf %166, %167 : vector<16x1xf32>
    %169 = vector.broadcast %168 : vector<16x1xf32> to vector<16x32xf32>
    %170 = arith.subf %160, %169 : vector<16x32xf32>
    %171 = arith.mulf %170, %170 : vector<16x32xf32>
    %cst_73 = arith.constant dense<0.000000e+00> : vector<16xf32>
    %172 = vector.multi_reduction <add>, %171, %cst_73 [1] : vector<16x32xf32> to vector<16xf32>
    %173 = vector.shape_cast %172 : vector<16xf32> to vector<16x1xf32>
    %cst_74 = arith.constant 3.200000e+01 : f32
    %174 = vector.broadcast %cst_74 : f32 to vector<16x1xf32>
    %175 = arith.divf %173, %174 : vector<16x1xf32>
    %176 = vector.broadcast %168 : vector<16x1xf32> to vector<16x32xf32>
    %177 = arith.subf %160, %176 : vector<16x32xf32>
    %cst_75 = arith.constant 9.99999996E-13 : f32
    %178 = vector.broadcast %cst_75 : f32 to vector<16x1xf32>
    %179 = arith.addf %175, %178 : vector<16x1xf32>
    %180 = math.rsqrt %179 : vector<16x1xf32>
    %181 = vector.broadcast %180 : vector<16x1xf32> to vector<16x32xf32>
    %182 = arith.mulf %177, %181 : vector<16x32xf32>
    %183 = vector.broadcast %162 : vector<1x32xf32> to vector<16x32xf32>
    %184 = arith.mulf %182, %183 : vector<16x32xf32>
    %185 = vector.broadcast %164 : vector<1x32xf32> to vector<16x32xf32>
    %186 = arith.addf %184, %185 : vector<16x32xf32>
    %c1 = arith.constant 1 : index
    %c0_76 = arith.constant 0 : index
    %c0_77 = arith.constant 0 : index
    %187 = vector.load %arg4[%c1, %c0_76, %c0_77] : memref<2x32x96xbf16, #tpu.memory_space<vmem>>, vector<1x32x96xbf16>
    %188 = vector.shape_cast %187 : vector<1x32x96xbf16> to vector<32x96xbf16>
    %189 = arith.truncf %186 : vector<16x32xf32> to vector<16x32xbf16>
    %cst_78 = arith.constant dense<0.000000e+00> : vector<16x96xf32>
    %190 = tpu.matmul %189, %188, %cst_78 {dimension_numbers = #tpu.dot_dimension_numbers<[1], [0], [0], [1], [0, 0, 1, 1], [], []>} : vector<16x32xbf16>, vector<32x96xbf16>, vector<16x96xf32> -> vector<16x96xf32>
    %c1_79 = arith.constant 1 : index
    %c0_80 = arith.constant 0 : index
    %c0_81 = arith.constant 0 : index
    %191 = vector.load %arg5[%c1_79, %c0_80, %c0_81] : memref<2x1x96xf32, #tpu.memory_space<vmem>>, vector<1x1x96xf32>
    %192 = vector.shape_cast %191 : vector<1x1x96xf32> to vector<1x96xf32>
    %193 = vector.broadcast %192 : vector<1x96xf32> to vector<16x96xf32>
    %194 = arith.addf %190, %193 : vector<16x96xf32>
    %195 = vector.extract_strided_slice %194 {offsets = [0, 0], sizes = [16, 32], strides = [1, 1]} : vector<16x96xf32> to vector<16x32xf32>
    %196 = vector.extract_strided_slice %195 {offsets = [0, 0], sizes = [16, 8], strides = [1, 1]} : vector<16x32xf32> to vector<16x8xf32>
    %197 = vector.extract_strided_slice %195 {offsets = [0, 8], sizes = [16, 8], strides = [1, 1]} : vector<16x32xf32> to vector<16x8xf32>
    %198 = vector.extract_strided_slice %195 {offsets = [0, 16], sizes = [16, 8], strides = [1, 1]} : vector<16x32xf32> to vector<16x8xf32>
    %199 = vector.extract_strided_slice %195 {offsets = [0, 24], sizes = [16, 8], strides = [1, 1]} : vector<16x32xf32> to vector<16x8xf32>
    %200 = vector.shape_cast %196 : vector<16x8xf32> to vector<1x16x8xf32>
    %201 = vector.shape_cast %197 : vector<16x8xf32> to vector<1x16x8xf32>
    %202 = vector.shape_cast %198 : vector<16x8xf32> to vector<1x16x8xf32>
    %203 = vector.shape_cast %199 : vector<16x8xf32> to vector<1x16x8xf32>
    %204 = tpu.concatenate %200, %201, %202, %203 in 0 : vector<1x16x8xf32>, vector<1x16x8xf32>, vector<1x16x8xf32>, vector<1x16x8xf32> -> vector<4x16x8xf32>
    %205 = arith.truncf %204 : vector<4x16x8xf32> to vector<4x16x8xbf16>
    %206 = vector.extract_strided_slice %194 {offsets = [0, 32], sizes = [16, 32], strides = [1, 1]} : vector<16x96xf32> to vector<16x32xf32>
    %207 = vector.extract_strided_slice %206 {offsets = [0, 0], sizes = [16, 8], strides = [1, 1]} : vector<16x32xf32> to vector<16x8xf32>
    %208 = vector.extract_strided_slice %206 {offsets = [0, 8], sizes = [16, 8], strides = [1, 1]} : vector<16x32xf32> to vector<16x8xf32>
    %209 = vector.extract_strided_slice %206 {offsets = [0, 16], sizes = [16, 8], strides = [1, 1]} : vector<16x32xf32> to vector<16x8xf32>
    %210 = vector.extract_strided_slice %206 {offsets = [0, 24], sizes = [16, 8], strides = [1, 1]} : vector<16x32xf32> to vector<16x8xf32>
    %211 = vector.shape_cast %207 : vector<16x8xf32> to vector<1x16x8xf32>
    %212 = vector.shape_cast %208 : vector<16x8xf32> to vector<1x16x8xf32>
    %213 = vector.shape_cast %209 : vector<16x8xf32> to vector<1x16x8xf32>
    %214 = vector.shape_cast %210 : vector<16x8xf32> to vector<1x16x8xf32>
    %215 = tpu.concatenate %211, %212, %213, %214 in 0 : vector<1x16x8xf32>, vector<1x16x8xf32>, vector<1x16x8xf32>, vector<1x16x8xf32> -> vector<4x16x8xf32>
    %216 = arith.truncf %215 : vector<4x16x8xf32> to vector<4x16x8xbf16>
    %217 = vector.extract_strided_slice %194 {offsets = [0, 64], sizes = [16, 32], strides = [1, 1]} : vector<16x96xf32> to vector<16x32xf32>
    %218 = vector.extract_strided_slice %217 {offsets = [0, 0], sizes = [16, 8], strides = [1, 1]} : vector<16x32xf32> to vector<16x8xf32>
    %219 = vector.extract_strided_slice %217 {offsets = [0, 8], sizes = [16, 8], strides = [1, 1]} : vector<16x32xf32> to vector<16x8xf32>
    %220 = vector.extract_strided_slice %217 {offsets = [0, 16], sizes = [16, 8], strides = [1, 1]} : vector<16x32xf32> to vector<16x8xf32>
    %221 = vector.extract_strided_slice %217 {offsets = [0, 24], sizes = [16, 8], strides = [1, 1]} : vector<16x32xf32> to vector<16x8xf32>
    %222 = vector.shape_cast %218 : vector<16x8xf32> to vector<1x16x8xf32>
    %223 = vector.shape_cast %219 : vector<16x8xf32> to vector<1x16x8xf32>
    %224 = vector.shape_cast %220 : vector<16x8xf32> to vector<1x16x8xf32>
    %225 = vector.shape_cast %221 : vector<16x8xf32> to vector<1x16x8xf32>
    %226 = tpu.concatenate %222, %223, %224, %225 in 0 : vector<1x16x8xf32>, vector<1x16x8xf32>, vector<1x16x8xf32>, vector<1x16x8xf32> -> vector<4x16x8xf32>
    %227 = arith.truncf %226 : vector<4x16x8xf32> to vector<4x16x8xbf16>
    %cst_82 = arith.constant dense<0.000000e+00> : vector<4x16x16xf32>
    %228 = tpu.matmul %205, %216, %cst_82 {dimension_numbers = #tpu.dot_dimension_numbers<[2], [2], [1], [1], [0, 0, 0, 1, 1, 1], [0], [0]>} : vector<4x16x8xbf16>, vector<4x16x8xbf16>, vector<4x16x16xf32> -> vector<4x16x16xf32>
    %229 = vector.shape_cast %25 : vector<16x16xf32> to vector<1x16x16xf32>
    %230 = vector.broadcast %229 : vector<1x16x16xf32> to vector<4x16x16xf32>
    %231 = arith.addf %228, %230 : vector<4x16x16xf32>
    %cst_83 = arith.constant dense<0xFF800000> : vector<4x16xf32>
    %232 = vector.multi_reduction <maximumf>, %231, %cst_83 [2] : vector<4x16x16xf32> to vector<4x16xf32>
    %233 = vector.shape_cast %232 : vector<4x16xf32> to vector<4x16x1xf32>
    %234 = vector.broadcast %233 : vector<4x16x1xf32> to vector<4x16x16xf32>
    %235 = arith.subf %231, %234 : vector<4x16x16xf32>
    %236 = math.exp %235 : vector<4x16x16xf32>
    %cst_84 = arith.constant dense<0.000000e+00> : vector<4x16xf32>
    %237 = vector.multi_reduction <add>, %236, %cst_84 [2] : vector<4x16x16xf32> to vector<4x16xf32>
    %238 = vector.shape_cast %237 : vector<4x16xf32> to vector<4x16x1xf32>
    %239 = tpu.reciprocal %238 {approx = true} : vector<4x16x1xf32> -> vector<4x16x1xf32>
    %240 = vector.broadcast %239 : vector<4x16x1xf32> to vector<4x16x16xf32>
    %241 = arith.mulf %236, %240 : vector<4x16x16xf32>
    %242 = arith.truncf %241 : vector<4x16x16xf32> to vector<4x16x16xbf16>
    %cst_85 = arith.constant dense<0.000000e+00> : vector<4x16x8xf32>
    %243 = tpu.matmul %242, %227, %cst_85 {dimension_numbers = #tpu.dot_dimension_numbers<[2], [1], [1], [2], [0, 0, 0, 1, 1, 2], [0], [0]>} : vector<4x16x16xbf16>, vector<4x16x8xbf16>, vector<4x16x8xf32> -> vector<4x16x8xf32>
    %244 = vector.extract_strided_slice %243 {offsets = [0, 0, 0], sizes = [1, 16, 8], strides = [1, 1, 1]} : vector<4x16x8xf32> to vector<1x16x8xf32>
    %245 = vector.shape_cast %244 : vector<1x16x8xf32> to vector<16x8xf32>
    %c0_86 = arith.constant 0 : index
    %c0_87 = arith.constant 0 : index
    %246 = vector.load %arg21[%c0_86, %c0_87] : memref<16x32xf32, #tpu.memory_space<vmem>>, vector<16x8xf32>
    tpu.vector_store %arg21[%c0_86, %c0_87], %245 {strides = array<i32>} : memref<16x32xf32, #tpu.memory_space<vmem>>, vector<16x8xf32>,
    %247 = vector.extract_strided_slice %243 {offsets = [1, 0, 0], sizes = [1, 16, 8], strides = [1, 1, 1]} : vector<4x16x8xf32> to vector<1x16x8xf32>
    %248 = vector.shape_cast %247 : vector<1x16x8xf32> to vector<16x8xf32>
    %c0_88 = arith.constant 0 : index
    %c8_89 = arith.constant 8 : index
    %249 = vector.load %arg21[%c0_88, %c8_89] : memref<16x32xf32, #tpu.memory_space<vmem>>, vector<16x8xf32>
    tpu.vector_store %arg21[%c0_88, %c8_89], %248 {strides = array<i32>} : memref<16x32xf32, #tpu.memory_space<vmem>>, vector<16x8xf32>,
    %250 = vector.extract_strided_slice %243 {offsets = [2, 0, 0], sizes = [1, 16, 8], strides = [1, 1, 1]} : vector<4x16x8xf32> to vector<1x16x8xf32>
    %251 = vector.shape_cast %250 : vector<1x16x8xf32> to vector<16x8xf32>
    %c0_90 = arith.constant 0 : index
    %c16_91 = arith.constant 16 : index
    %252 = vector.load %arg21[%c0_90, %c16_91] : memref<16x32xf32, #tpu.memory_space<vmem>>, vector<16x8xf32>
    tpu.vector_store %arg21[%c0_90, %c16_91], %251 {strides = array<i32>} : memref<16x32xf32, #tpu.memory_space<vmem>>, vector<16x8xf32>,
    %253 = vector.extract_strided_slice %243 {offsets = [3, 0, 0], sizes = [1, 16, 8], strides = [1, 1, 1]} : vector<4x16x8xf32> to vector<1x16x8xf32>
    %254 = vector.shape_cast %253 : vector<1x16x8xf32> to vector<16x8xf32>
    %c0_92 = arith.constant 0 : index
    %c24_93 = arith.constant 24 : index
    %255 = vector.load %arg21[%c0_92, %c24_93] : memref<16x32xf32, #tpu.memory_space<vmem>>, vector<16x8xf32>
    tpu.vector_store %arg21[%c0_92, %c24_93], %254 {strides = array<i32>} : memref<16x32xf32, #tpu.memory_space<vmem>>, vector<16x8xf32>,
    %c0_94 = arith.constant 0 : index
    %c0_95 = arith.constant 0 : index
    %256 = vector.load %arg21[%c0_94, %c0_95] : memref<16x32xf32, #tpu.memory_space<vmem>>, vector<16x32xf32>
    %c1_96 = arith.constant 1 : index
    %c0_97 = arith.constant 0 : index
    %c0_98 = arith.constant 0 : index
    %257 = vector.load %arg6[%c1_96, %c0_97, %c0_98] : memref<2x32x32xbf16, #tpu.memory_space<vmem>>, vector<1x32x32xbf16>
    %258 = vector.shape_cast %257 : vector<1x32x32xbf16> to vector<32x32xbf16>
    %259 = arith.truncf %256 : vector<16x32xf32> to vector<16x32xbf16>
    %cst_99 = arith.constant dense<0.000000e+00> : vector<16x32xf32>
    %260 = tpu.matmul %259, %258, %cst_99 {dimension_numbers = #tpu.dot_dimension_numbers<[1], [0], [0], [1], [0, 0, 1, 1], [], []>} : vector<16x32xbf16>, vector<32x32xbf16>, vector<16x32xf32> -> vector<16x32xf32>
    %c1_100 = arith.constant 1 : index
    %c0_101 = arith.constant 0 : index
    %c0_102 = arith.constant 0 : index
    %261 = vector.load %arg7[%c1_100, %c0_101, %c0_102] : memref<2x1x32xf32, #tpu.memory_space<vmem>>, vector<1x1x32xf32>
    %262 = vector.shape_cast %261 : vector<1x1x32xf32> to vector<1x32xf32>
    %263 = vector.broadcast %262 : vector<1x32xf32> to vector<16x32xf32>
    %264 = arith.addf %260, %263 : vector<16x32xf32>
    %265 = arith.addf %186, %264 : vector<16x32xf32>
    %c1_103 = arith.constant 1 : index
    %c0_104 = arith.constant 0 : index
    %c0_105 = arith.constant 0 : index
    %266 = vector.load %arg8[%c1_103, %c0_104, %c0_105] : memref<2x1x32xf32, #tpu.memory_space<vmem>>, vector<1x1x32xf32>
    %267 = vector.shape_cast %266 : vector<1x1x32xf32> to vector<1x32xf32>
    %c1_106 = arith.constant 1 : index
    %c0_107 = arith.constant 0 : index
    %c0_108 = arith.constant 0 : index
    %268 = vector.load %arg9[%c1_106, %c0_107, %c0_108] : memref<2x1x32xf32, #tpu.memory_space<vmem>>, vector<1x1x32xf32>
    %269 = vector.shape_cast %268 : vector<1x1x32xf32> to vector<1x32xf32>
    %cst_109 = arith.constant dense<0.000000e+00> : vector<16xf32>
    %270 = vector.multi_reduction <add>, %265, %cst_109 [1] : vector<16x32xf32> to vector<16xf32>
    %271 = vector.shape_cast %270 : vector<16xf32> to vector<16x1xf32>
    %cst_110 = arith.constant 3.200000e+01 : f32
    %272 = vector.broadcast %cst_110 : f32 to vector<16x1xf32>
    %273 = arith.divf %271, %272 : vector<16x1xf32>
    %274 = vector.broadcast %273 : vector<16x1xf32> to vector<16x32xf32>
    %275 = arith.subf %265, %274 : vector<16x32xf32>
    %276 = arith.mulf %275, %275 : vector<16x32xf32>
    %cst_111 = arith.constant dense<0.000000e+00> : vector<16xf32>
    %277 = vector.multi_reduction <add>, %276, %cst_111 [1] : vector<16x32xf32> to vector<16xf32>
    %278 = vector.shape_cast %277 : vector<16xf32> to vector<16x1xf32>
    %cst_112 = arith.constant 3.200000e+01 : f32
    %279 = vector.broadcast %cst_112 : f32 to vector<16x1xf32>
    %280 = arith.divf %278, %279 : vector<16x1xf32>
    %281 = vector.broadcast %273 : vector<16x1xf32> to vector<16x32xf32>
    %282 = arith.subf %265, %281 : vector<16x32xf32>
    %cst_113 = arith.constant 9.99999996E-13 : f32
    %283 = vector.broadcast %cst_113 : f32 to vector<16x1xf32>
    %284 = arith.addf %280, %283 : vector<16x1xf32>
    %285 = math.rsqrt %284 : vector<16x1xf32>
    %286 = vector.broadcast %285 : vector<16x1xf32> to vector<16x32xf32>
    %287 = arith.mulf %282, %286 : vector<16x32xf32>
    %288 = vector.broadcast %267 : vector<1x32xf32> to vector<16x32xf32>
    %289 = arith.mulf %287, %288 : vector<16x32xf32>
    %290 = vector.broadcast %269 : vector<1x32xf32> to vector<16x32xf32>
    %291 = arith.addf %289, %290 : vector<16x32xf32>
    %c1_114 = arith.constant 1 : index
    %c0_115 = arith.constant 0 : index
    %c0_116 = arith.constant 0 : index
    %292 = vector.load %arg10[%c1_114, %c0_115, %c0_116] : memref<2x32x128xbf16, #tpu.memory_space<vmem>>, vector<1x32x128xbf16>
    %293 = vector.shape_cast %292 : vector<1x32x128xbf16> to vector<32x128xbf16>
    %294 = arith.truncf %291 : vector<16x32xf32> to vector<16x32xbf16>
    %cst_117 = arith.constant dense<0.000000e+00> : vector<16x128xf32>
    %295 = tpu.matmul %294, %293, %cst_117 {dimension_numbers = #tpu.dot_dimension_numbers<[1], [0], [0], [1], [0, 0, 1, 1], [], []>} : vector<16x32xbf16>, vector<32x128xbf16>, vector<16x128xf32> -> vector<16x128xf32>
    %c1_118 = arith.constant 1 : index
    %c0_119 = arith.constant 0 : index
    %c0_120 = arith.constant 0 : index
    %296 = vector.load %arg11[%c1_118, %c0_119, %c0_120] : memref<2x1x128xf32, #tpu.memory_space<vmem>>, vector<1x1x128xf32>
    %297 = vector.shape_cast %296 : vector<1x1x128xf32> to vector<1x128xf32>
    %298 = vector.broadcast %297 : vector<1x128xf32> to vector<16x128xf32>
    %299 = arith.addf %295, %298 : vector<16x128xf32>
    %300 = arith.mulf %299, %299 : vector<16x128xf32>
    %301 = arith.mulf %299, %300 : vector<16x128xf32>
    %cst_121 = arith.constant 4.471500e-02 : f32
    %302 = vector.broadcast %cst_121 : f32 to vector<16x128xf32>
    %303 = arith.mulf %302, %301 : vector<16x128xf32>
    %304 = arith.addf %299, %303 : vector<16x128xf32>
    %cst_122 = arith.constant 0.797884583 : f32
    %305 = vector.broadcast %cst_122 : f32 to vector<16x128xf32>
    %306 = arith.mulf %305, %304 : vector<16x128xf32>
    %307 = math.tanh %306 : vector<16x128xf32>
    %cst_123 = arith.constant 1.000000e+00 : f32
    %308 = vector.broadcast %cst_123 : f32 to vector<16x128xf32>
    %309 = arith.addf %308, %307 : vector<16x128xf32>
    %cst_124 = arith.constant 5.000000e-01 : f32
    %310 = vector.broadcast %cst_124 : f32 to vector<16x128xf32>
    %311 = arith.mulf %310, %309 : vector<16x128xf32>
    %312 = arith.mulf %299, %311 : vector<16x128xf32>
    %c1_125 = arith.constant 1 : index
    %c0_126 = arith.constant 0 : index
    %c0_127 = arith.constant 0 : index
    %313 = vector.load %arg12[%c1_125, %c0_126, %c0_127] : memref<2x128x32xbf16, #tpu.memory_space<vmem>>, vector<1x128x32xbf16>
    %314 = vector.shape_cast %313 : vector<1x128x32xbf16> to vector<128x32xbf16>
    %315 = arith.truncf %312 : vector<16x128xf32> to vector<16x128xbf16>
    %cst_128 = arith.constant dense<0.000000e+00> : vector<16x32xf32>
    %316 = tpu.matmul %315, %314, %cst_128 {dimension_numbers = #tpu.dot_dimension_numbers<[1], [0], [0], [1], [0, 0, 1, 1], [], []>} : vector<16x128xbf16>, vector<128x32xbf16>, vector<16x32xf32> -> vector<16x32xf32>
    %c1_129 = arith.constant 1 : index
    %c0_130 = arith.constant 0 : index
    %c0_131 = arith.constant 0 : index
    %317 = vector.load %arg13[%c1_129, %c0_130, %c0_131] : memref<2x1x32xf32, #tpu.memory_space<vmem>>, vector<1x1x32xf32>
    %318 = vector.shape_cast %317 : vector<1x1x32xf32> to vector<1x32xf32>
    %319 = vector.broadcast %318 : vector<1x32xf32> to vector<16x32xf32>
    %320 = arith.addf %316, %319 : vector<16x32xf32>
    %321 = arith.addf %291, %320 : vector<16x32xf32>
    %c1_132 = arith.constant 1 : index
    %c0_133 = arith.constant 0 : index
    %c0_134 = arith.constant 0 : index
    %322 = vector.load %arg14[%c1_132, %c0_133, %c0_134] : memref<2x1x32xf32, #tpu.memory_space<vmem>>, vector<1x1x32xf32>
    %323 = vector.shape_cast %322 : vector<1x1x32xf32> to vector<1x32xf32>
    %c1_135 = arith.constant 1 : index
    %c0_136 = arith.constant 0 : index
    %c0_137 = arith.constant 0 : index
    %324 = vector.load %arg15[%c1_135, %c0_136, %c0_137] : memref<2x1x32xf32, #tpu.memory_space<vmem>>, vector<1x1x32xf32>
    %325 = vector.shape_cast %324 : vector<1x1x32xf32> to vector<1x32xf32>
    %cst_138 = arith.constant dense<0.000000e+00> : vector<16xf32>
    %326 = vector.multi_reduction <add>, %321, %cst_138 [1] : vector<16x32xf32> to vector<16xf32>
    %327 = vector.shape_cast %326 : vector<16xf32> to vector<16x1xf32>
    %cst_139 = arith.constant 3.200000e+01 : f32
    %328 = vector.broadcast %cst_139 : f32 to vector<16x1xf32>
    %329 = arith.divf %327, %328 : vector<16x1xf32>
    %330 = vector.broadcast %329 : vector<16x1xf32> to vector<16x32xf32>
    %331 = arith.subf %321, %330 : vector<16x32xf32>
    %332 = arith.mulf %331, %331 : vector<16x32xf32>
    %cst_140 = arith.constant dense<0.000000e+00> : vector<16xf32>
    %333 = vector.multi_reduction <add>, %332, %cst_140 [1] : vector<16x32xf32> to vector<16xf32>
    %334 = vector.shape_cast %333 : vector<16xf32> to vector<16x1xf32>
    %cst_141 = arith.constant 3.200000e+01 : f32
    %335 = vector.broadcast %cst_141 : f32 to vector<16x1xf32>
    %336 = arith.divf %334, %335 : vector<16x1xf32>
    %337 = vector.broadcast %329 : vector<16x1xf32> to vector<16x32xf32>
    %338 = arith.subf %321, %337 : vector<16x32xf32>
    %cst_142 = arith.constant 9.99999996E-13 : f32
    %339 = vector.broadcast %cst_142 : f32 to vector<16x1xf32>
    %340 = arith.addf %336, %339 : vector<16x1xf32>
    %341 = math.rsqrt %340 : vector<16x1xf32>
    %342 = vector.broadcast %341 : vector<16x1xf32> to vector<16x32xf32>
    %343 = arith.mulf %338, %342 : vector<16x32xf32>
    %344 = vector.broadcast %323 : vector<1x32xf32> to vector<16x32xf32>
    %345 = arith.mulf %343, %344 : vector<16x32xf32>
    %346 = vector.broadcast %325 : vector<1x32xf32> to vector<16x32xf32>
    %347 = arith.addf %345, %346 : vector<16x32xf32>
    %c0_143 = arith.constant 0 : index
    %c0_144 = arith.constant 0 : index
    %348 = vector.load %arg16[%c0_143, %c0_144] : memref<32x32xbf16, #tpu.memory_space<vmem>>, vector<32x32xbf16>
    %349 = arith.truncf %347 : vector<16x32xf32> to vector<16x32xbf16>
    %cst_145 = arith.constant dense<0.000000e+00> : vector<16x32xf32>
    %350 = tpu.matmul %349, %348, %cst_145 {dimension_numbers = #tpu.dot_dimension_numbers<[1], [0], [0], [1], [0, 0, 1, 1], [], []>} : vector<16x32xbf16>, vector<32x32xbf16>, vector<16x32xf32> -> vector<16x32xf32>
    %c0_146 = arith.constant 0 : index
    %c0_147 = arith.constant 0 : index
    %351 = vector.load %arg17[%c0_146, %c0_147] : memref<1x32xf32, #tpu.memory_space<vmem>>, vector<1x32xf32>
    %352 = vector.broadcast %351 : vector<1x32xf32> to vector<16x32xf32>
    %353 = arith.addf %350, %352 : vector<16x32xf32>
    %354 = math.tanh %353 : vector<16x32xf32>
    %c0_148 = arith.constant 0 : index
    %c0_149 = arith.constant 0 : index
    %355 = vector.load %arg18[%c0_148, %c0_149] : memref<32x128xbf16, #tpu.memory_space<vmem>>, vector<32x128xbf16>
    %356 = arith.truncf %354 : vector<16x32xf32> to vector<16x32xbf16>
    %cst_150 = arith.constant dense<0.000000e+00> : vector<16x128xf32>
    %357 = tpu.matmul %356, %355, %cst_150 {dimension_numbers = #tpu.dot_dimension_numbers<[1], [0], [0], [1], [0, 0, 1, 1], [], []>} : vector<16x32xbf16>, vector<32x128xbf16>, vector<16x128xf32> -> vector<16x128xf32>
    %c0_151 = arith.constant 0 : index
    %c0_152 = arith.constant 0 : index
    %358 = vector.load %arg19[%c0_151, %c0_152] : memref<1x128xf32, #tpu.memory_space<vmem>>, vector<1x128xf32>
    %359 = vector.broadcast %358 : vector<1x128xf32> to vector<16x128xf32>
    %360 = arith.addf %357, %359 : vector<16x128xf32>
    %cst_153 = arith.constant dense<0xFF800000> : vector<16xf32>
    %361 = vector.multi_reduction <maximumf>, %360, %cst_153 [1] : vector<16x128xf32> to vector<16xf32>
    %362 = vector.shape_cast %361 : vector<16xf32> to vector<16x1xf32>
    %363 = vector.broadcast %362 : vector<16x1xf32> to vector<16x128xf32>
    %364 = arith.subf %360, %363 : vector<16x128xf32>
    %365 = math.exp %364 : vector<16x128xf32>
    %cst_154 = arith.constant dense<0.000000e+00> : vector<16xf32>
    %366 = vector.multi_reduction <add>, %365, %cst_154 [1] : vector<16x128xf32> to vector<16xf32>
    %367 = vector.shape_cast %366 : vector<16xf32> to vector<16x1xf32>
    %368 = vector.broadcast %367 : vector<16x1xf32> to vector<16x128xf32>
    %369 = arith.divf %365, %368 : vector<16x128xf32>
    %c0_155 = arith.constant 0 : index
    %c0_156 = arith.constant 0 : index
    %370 = vector.load %arg20[%c0_155, %c0_156] : memref<16x128xf32, #tpu.memory_space<vmem>>, vector<16x128xf32>
    tpu.vector_store %arg20[%c0_155, %c0_156], %369 {strides = array<i32>} : memref<16x128xf32, #tpu.memory_space<vmem>>, vector<16x128xf32>,
    return
  }
}

</mosaic_0001>

<bundles_post_ra>
// kernel: sentence_pair_classifier_forward.1
= control target key start
LH: loop header
LB: loop body
LE: loop exit
PB: predicated region body
PF: predicated region fallthrough
CT: control target
= control target key end

     0   :  { %vm70_vm0 = vcmask 261120   ;;  %v2787_v14 = vmov 0.0   ;;  %vm2788_vm1 = vmmov 0   ;;  %s2790_s25 = smov 120   ;;  %s2792_s27 = smov 96   ;;  %vm211_vm2 = vcmask 64512   ;;  %s3414_s0 = inlined_call_operand.vmem [shape: f32[16,32], index: 0, kind: input, shape index: {}]   ;;  %s3415_s4 = inlined_call_operand.vmem [shape: bf16[2,32,96], index: 4, kind: input, shape index: {}]   ;;  %s3416_s2 = inlined_call_operand.vmem [shape: f32[1,32], index: 2, kind: input, shape index: {}]   ;;  %s3417_s3 = inlined_call_operand.vmem [shape: f32[1,32], index: 3, kind: input, shape index: {}]   ;;  %s3418_s5 = inlined_call_operand.vmem [shape: f32[2,1,96], index: 5, kind: input, shape index: {}]   ;;  %s3419_s1 = inlined_call_operand.vmem [shape: f32[16,16], index: 1, kind: input, shape index: {}]   ;;  %s3420_s6 = inlined_call_operand.vmem [shape: bf16[2,32,32], index: 6, kind: input, shape index: {}]   ;;  %s3421_s7 = inlined_call_operand.vmem [shape: f32[2,1,32], index: 7, kind: input, shape index: {}]   ;;  %s3422_s10 = inlined_call_operand.vmem [shape: bf16[2,32,128], index: 10, kind: input, shape index: {}]   ;;  %s3423_s8 = inlined_call_operand.vmem [shape: f32[2,1,32], index: 8, kind: input, shape index: {}]   ;;  %s3424_s9 = inlined_call_operand.vmem [shape: f32[2,1,32], index: 9, kind: input, shape index: {}]   ;;  %s3425_s12 = inlined_call_operand.vmem [shape: bf16[2,128,32], index: 12, kind: input, shape index: {}]   ;;  %s3426_s11 = inlined_call_operand.vmem [shape: f32[2,1,128], index: 11, kind: input, shape index: {}]   ;;  %s3427_s13 = inlined_call_operand.vmem [shape: f32[2,1,32], index: 13, kind: input, shape index: {}]   ;;  %s3428_s14 = inlined_call_operand.vmem [shape: f32[2,1,32], index: 14, kind: input, shape index: {}]   ;;  %s3429_s15 = inlined_call_operand.vmem [shape: f32[2,1,32], index: 15, kind: input, shape index: {}]   ;;  %s3430_s16 = inlined_call_operand.vmem [shape: bf16[32,32], index: 16, kind: input, shape index: {}]   ;;  %s3431_s18 = inlined_call_operand.vmem [shape: bf16[32,128], index: 18, kind: input, shape index: {}]   ;;  %s3432_s17 = inlined_call_operand.vmem [shape: f32[1,32], index: 17, kind: input, shape index: {}]   ;;  %s3433_s19 = inlined_call_operand.vmem [shape: f32[1,128], index: 19, kind: input, shape index: {}]   ;;  %s3434_s20 = inlined_call_operand.vmem [shape: f32[16,128], index: 20, kind: output, shape index: {}]  }
   0x1   :  { %3440 = sst [smem:[#allocation3_spill]] %s3414_s0  ;;  %2411 = vmatprep.subr.bf16.mxu1 %v2787_v14  ;;  %2415 = vmatprep.mubr.msk.bf16.mxu1 %vm2788_vm1, %v2787_v14  ;;  %v2990_v63 = vld [vmem:[%s3419_s1] sm:$0xff]  ;;  %vm409_vm3 = vcmask 130048   ;;  %s2794_s0 = smov 8   ;;  %vm700_vm4 = vcmask 130112   ;;  %vm711_vm5 = vcmask 195712  }
   0x2   :  { %3441 = sst [smem:[#allocation4_spill]] %s3415_s4  ;;  %2425 = vmatprep.subr.bf16.mxu0 %v2787_v14  ;;  %2427 = vmatprep.mubr.msk.bf16.mxu0 %vm2788_vm1, %v2787_v14  ;;  %s2795_s28 = smov 16   ;;  %vm722_vm6 = vcmask 261312  }
   0x3   :  { %3442 = sst [smem:[#allocation5_spill]] %s3416_s2  ;;  %s2789_s2 = smov 112  }
   0x4   :  { %3443 = sst [smem:[#allocation6_spill]] %s3417_s3  ;;  %s2791_s3 = smov 104  }
   0x5   :  { %3444 = sst [smem:[#allocation7_spill]] %s3418_s5  ;;  %s3438_s5 = smov 24  }
   0x6   :  { %s3445_s23 = sld [smem:[#allocation3_spill]] }
   0x7   :  { %s3446_s26 = sld [smem:[#allocation4_spill]] }
   0x8   :  { %s3447_s30 = sld [smem:[#allocation5_spill]] }
   0x9   :  { %s3448_s4 = sld [smem:[#allocation6_spill]] }
   0xa   :  { %s3449_s24 = sld [smem:[#allocation7_spill]] }
   0xc   :  { %v66_v0 = vld [vmem:[%s3445_s23] sm:$0xff]  ;;  %v67_v1 = vld [vmem:[%s3445_s23 + $0x8] sm:$0xff] }
   0xd   :  { %v71_v2 = vsel %vm70_vm0, %v66_v0, 0.0  ;;  %v74_v3 = vsel %vm70_vm0, %v67_v1, 0.0  ;;  %v2651_v15 = vld [vmem:[%s3446_s26 + $0x8] sm:$0xff]   ;;  %v2652_v16 = vld [vmem:[%s3446_s26] sm:$0xff]  }
   0xe   :  { %72 = vadd.xlane.f32.xlu0 %v71_v2  ;;  %2412 = vmatpush3.bf16.msra.mxu1 %v2651_v15  ;;  %v2225_v25 = vld [vmem:[%s3447_s30] ss:$0 sm:$0xff] }
   0xf   :  { %2413 = vmatprep.subr.bf16.mxu1 %v2787_v14  ;;  %v2226_v29 = vld [vmem:[%s3448_s4] ss:$0 sm:$0xff] }
  0x10   :  { %v2227_v35 = vld [vmem:[%s3449_s24] ss:$0 sm:$0xff] }
  0x12   :  { %75 = vadd.xlane.f32.xlu0 %v74_v3  ;;  %2414 = vmatpush3.bf16.msra.mxu1 %v2652_v16  ;;  %v2996_v3 = vld [vmem:[%s3419_s1 + $0x8] sm:$0xff]  ;;  %s2793_s1 = smov 64  }
  0x13   :  { %2419 = vmatprep.subr.bf16.mxu1 %v2787_v14 }
  0x97   :  { %v73_v4 = vpop.xlane.xlu0 %72 }
  0x98   :  { %v78_v5 = vmul.f32 0.03125, %v73_v4 }
  0x9a   :  { %v80_v6 = vsub.f32 %v66_v0, %v78_v5 }
  0x9b   :  { %v76_v7 = vpop.xlane.xlu0 %75 }
  0x9c   :  { %v79_v8 = vmul.f32 0.03125, %v76_v7  ;;  %v82_v9 = vmul.f32 %v80_v6, %v80_v6 }
  0x9e   :  { %v81_v10 = vsub.f32 %v67_v1, %v79_v8  ;;  %v84_v11 = vsel %vm70_vm0, %v82_v9, 0.0 }
  0x9f   :  { %85 = vadd.xlane.f32.xlu1 %v84_v11 }
  0xa0   :  { %v83_v12 = vmul.f32 %v81_v10, %v81_v10 }
  0xa2   :  { %v87_v13 = vsel %vm70_vm0, %v83_v12, 0.0 }
  0xa3   :  { %88 = vadd.xlane.f32.xlu1 %v87_v13 }
 0x128   :  { %v86_v17 = vpop.xlane.xlu1 %85 }
 0x129   :  { %v90_v18 = vmul.f32 0.03125, %v86_v17 }
 0x12b   :  { %v92_v19 = vadd.f32 1e-12, %v90_v18 }
 0x12c   :  { %v89_v20 = vpop.xlane.xlu1 %88 }
 0x12d   :  { %2683 = vrsqrt.f32 %v92_v19  ;;  %v91_v21 = vmul.f32 0.03125, %v89_v20 }
 0x12f   :  { %v93_v22 = vadd.f32 1e-12, %v91_v21 }
 0x131   :  { %2685 = vrsqrt.f32 %v93_v22 }
 0x13a   :  { %v2684_v23 = vpop.eup %2683 }
 0x13b   :  { %v96_v24 = vmul.f32 %v2684_v23, %v80_v6 }
 0x13d   :  { %v104_v28 = vmul.f32 %v2225_v25, %v96_v24 }
 0x13e   :  { %v2686_v26 = vpop.eup %2685 }
 0x13f   :  { %v97_v27 = vmul.f32 %v2686_v26, %v81_v10  ;;  %v2932_v31 = vadd.f32 %v2226_v29, %v104_v28 }
 0x141   :  { %v105_v30 = vmul.f32 %v2225_v25, %v97_v27 }
 0x143   :  { %v2934_v32 = vadd.f32 %v2226_v29, %v105_v30 }
 0x145   :  { %v120_v33 = vpack.c.bf16 %v2934_v32, %v2932_v31 }
 0x147   :  { %2416 = vmatmul.mubr.msk.bf16.vlgmr.msra.gmra.mxu1 %vm70_vm0, %v120_v33 }
 0x148   :  { %2421 = vmatprep.mubr.msk.bf16.mxu1 %vm2788_vm1, %v2787_v14 }
 0x207   :  { %v177_v34 = vpop.f32.mrf.mxu1 }
 0x208   :  { %v178_v38 = vadd.f32 %v2227_v35, %v177_v34 }
 0x209   :  { %v2417_v36 = vpop.f32.mrf.mxu1 }
 0x20b   :  { %v180_v37 = vpop.f32.mrf.mxu1 }
 0x20c   :  { %v181_v39 = vadd.f32 %v2227_v35, %v180_v37 }
 0x20d   :  { %v2418_v40 = vpop.f32.mrf.mxu1 }
 0x20e   :  { %v2626_v41 = vpack.i.bf16 %v181_v39, %v178_v38  ;;  %v2947_v42 = vpack.c.bf16 %v181_v39, %v178_v38 }
 0x210   :  { %2627 = vrot.lane.b32.xlu1 %v2626_v41, %s2789_s2  ;;  %2622 = vrot.lane.b32.xlu0 %v2626_v41, %s2790_s25 }
 0x214   :  { %2632 = vrot.lane.b32.xlu1 %v2626_v41, %s2791_s3 }
 0x218   :  { %209 = vrot.lane.b32.xlu1 %v2947_v42, %s2792_s27 }
 0x282   :  { %v2628_v43 = vpop.permute.xlu1 %2627  ;;  %v2623_v44 = vpop.permute.xlu0 %2622 }
 0x283   :  { %v2630_v45 = vunpack.i.h.bf16 %v2628_v43  ;;  %v2629_v46 = vunpack.i.l.bf16 %v2628_v43  ;;  %v2625_v47 = vunpack.i.h.bf16 %v2623_v44  ;;  %v2624_v48 = vunpack.i.l.bf16 %v2623_v44 }
 0x285   :  { %v2951_v49 = vpack.c.bf16 %v2630_v45, %v2629_v46  ;;  %v2953_v50 = vpack.c.bf16 %v2625_v47, %v2624_v48 }
 0x286   :  { %v2633_v51 = vpop.permute.xlu1 %2632 }
 0x287   :  { %v2635_v52 = vunpack.i.h.bf16 %v2633_v51  ;;  %v2634_v53 = vunpack.i.l.bf16 %v2633_v51  ;;  %260 = vrot.lane.b32.xlu0 %v2953_v50, %s2792_s27  ;;  %310 = vrot.lane.b32.xlu1 %v2951_v49, %s2792_s27 }
 0x289   :  { %v2959_v54 = vpack.c.bf16 %v2635_v52, %v2634_v53 }
 0x28a   :  { %v210_v55 = vpop.permute.xlu1 %209 }
 0x28b   :  { %v216_v56 = vsel %vm211_vm2, %v210_v55, 0  ;;  %360 = vrot.lane.b32.xlu0 %v2959_v54, %s2792_s27 }
 0x28c   :  { %2420 = vmatpush3.bf16.xpose.msra.mxu1 %v216_v56 }
 0x28d   :  { %2431 = vmatprep.subr.bf16.mxu1 %v2787_v14 }
 0x293   :  { %2422 = vmatmul.mubr.msk.bf16.vlgmr.msra.gmra.mxu1 %vm211_vm2, %v2947_v42 }
 0x294   :  { %2433 = vmatprep.mubr.msk.bf16.mxu1 %vm2788_vm1, %v2787_v14 }
 0x2f9   :  { %v261_v57 = vpop.permute.xlu0 %260  ;;  %v311_v58 = vpop.permute.xlu1 %310 }
 0x2fa   :  { %v316_v59 = vsel %vm211_vm2, %v311_v58, 0  ;;  %v266_v60 = vsel %vm211_vm2, %v261_v57, 0 }
 0x2fb   :  { %2426 = vmatpush3.bf16.xpose.msra.mxu0 %v266_v60  ;;  %2432 = vmatpush3.bf16.xpose.msra.mxu1 %v316_v59 }
 0x2fc   :  { %2437 = vmatprep.subr.bf16.mxu0 %v2787_v14  ;;  %2443 = vmatprep.subr.bf16.mxu1 %v2787_v14 }
 0x2fd   :  { %v361_v61 = vpop.permute.xlu0 %360 }
 0x2fe   :  { %v366_v62 = vsel %vm211_vm2, %v361_v61, 0 }
 0x302   :  { %2428 = vmatmul.mubr.msk.bf16.vlgmr.msra.gmra.mxu0 %vm211_vm2, %v2953_v50  ;;  %2434 = vmatmul.mubr.msk.bf16.vlgmr.msra.gmra.mxu1 %vm211_vm2, %v2951_v49 }
 0x303   :  { %2438 = vmatpush3.bf16.xpose.msra.mxu0 %v366_v62  ;;  %2439 = vmatprep.mubr.msk.bf16.mxu0 %vm2788_vm1, %v2787_v14 }
 0x304   :  { %2445 = vmatprep.mubr.msk.bf16.mxu1 %vm2788_vm1, %v2787_v14  ;;  %2449 = vmatprep.subr.bf16.mxu0 %v2787_v14 }
 0x30a   :  { %2440 = vmatmul.mubr.msk.bf16.vlgmr.msra.gmra.mxu0 %vm211_vm2, %v2959_v54 }
 0x30b   :  { %2451 = vmatprep.mubr.msk.bf16.mxu0 %vm2788_vm1, %v2787_v14 }
 0x353   :  { %v252_v0 = vpop.f32.mrf.mxu1 }
 0x354   :  { %v253_v1 = vadd.f32 %v252_v0, %v2990_v63 }
 0x355   :  { %v2423_v2 = vpop.f32.mrf.mxu1 }
 0x356   :  { %v410_v4 = vsel %vm409_vm3, %v253_v1, -inf }
 0x357   :  { %411 = vmax.xlane.f32.xlu1 %v410_v4  ;;  %v255_v5 = vpop.f32.mrf.mxu1 }
 0x358   :  { %v256_v6 = vadd.f32 %v255_v5, %v2996_v3 }
 0x359   :  { %v2424_v7 = vpop.f32.mrf.mxu1 }
 0x35a   :  { %v413_v8 = vsel %vm409_vm3, %v256_v6, -inf }
 0x35b   :  { %414 = vmax.xlane.f32.xlu0 %v413_v8 }
 0x3c2   :  { %v302_v9 = vpop.f32.mrf.mxu0  ;;  %v352_v10 = vpop.f32.mrf.mxu1 }
 0x3c3   :  { %v303_v11 = vadd.f32 %v302_v9, %v2990_v63  ;;  %v353_v12 = vadd.f32 %v352_v10, %v2990_v63 }
 0x3c4   :  { %v2429_v13 = vpop.f32.mrf.mxu0  ;;  %v2435_v15 = vpop.f32.mrf.mxu1 }
 0x3c5   :  { %v416_v16 = vsel %vm409_vm3, %v303_v11, -inf  ;;  %v422_v17 = vsel %vm409_vm3, %v353_v12, -inf }
 0x3c6   :  { %v305_v18 = vpop.f32.mrf.mxu0  ;;  %417 = vmax.xlane.f32.xlu0 %v416_v16  ;;  %423 = vmax.xlane.f32.xlu1 %v422_v17  ;;  %v355_v19 = vpop.f32.mrf.mxu1 }
 0x3c7   :  { %v306_v20 = vadd.f32 %v305_v18, %v2996_v3  ;;  %v356_v23 = vadd.f32 %v355_v19, %v2996_v3 }
 0x3c8   :  { %v2430_v21 = vpop.f32.mrf.mxu0  ;;  %v2436_v22 = vpop.f32.mrf.mxu1 }
 0x3c9   :  { %v419_v24 = vsel %vm409_vm3, %v306_v20, -inf  ;;  %v425_v29 = vsel %vm409_vm3, %v356_v23, -inf }
 0x3ca   :  { %v402_v25 = vpop.f32.mrf.mxu0  ;;  %420 = vmax.xlane.f32.xlu0 %v419_v24 }
 0x3cb   :  { %v403_v26 = vadd.f32 %v402_v25, %v2990_v63 }
 0x3cc   :  { %v2441_v27 = vpop.f32.mrf.mxu0 }
 0x3cd   :  { %v428_v28 = vsel %vm409_vm3, %v403_v26, -inf }
 0x3ce   :  { %v405_v30 = vpop.f32.mrf.mxu0  ;;  %429 = vmax.xlane.f32.xlu1 %v428_v28  ;;  %426 = vmax.xlane.f32.xlu0 %v425_v29 }
 0x3cf   :  { %v406_v33 = vadd.f32 %v405_v30, %v2996_v3 }
 0x3d0   :  { %v2442_v34 = vpop.f32.mrf.mxu0 }
 0x3d1   :  { %v431_v35 = vsel %vm409_vm3, %v406_v33, -inf }
 0x3d2   :  { %432 = vmax.xlane.f32.xlu0 %v431_v35 }
 0x3df   :  { %502 = vrot.lane.b32.xlu1 %v2947_v42, %s2793_s1 }
 0x3e0   :  { %v412_v38 = vpop.xlane.xlu1 %411 }
 0x3e1   :  { %v434_v40 = vsub.f32 %v253_v1, %v412_v38 }
 0x3e3   :  { %v442_v41 = vmul.f32 1.442695, %v434_v40 }
 0x3e4   :  { %v415_v36 = vpop.xlane.xlu0 %414 }
 0x3e5   :  { %v435_v37 = vsub.f32 %v256_v6, %v415_v36 }
 0x3e7   :  { %v444_v39 = vmul.f32 1.442695, %v435_v37 }
 0x3e9   :  { %2687 = vpow2.f32 %v444_v39 }
 0x3ea   :  { %2689 = vpow2.f32 %v442_v41 }
 0x3f6   :  { %v2688_v43 = vpop.eup %2687 }
 0x3f7   :  { %v461_v44 = vsel %vm409_vm3, %v2688_v43, 0.0  ;;  %v2690_v45 = vpop.eup %2689 }
 0x3f8   :  { %462 = vadd.xlane.f32.xlu0 %v461_v44  ;;  %v458_v46 = vsel %vm409_vm3, %v2690_v45, 0.0 }
 0x403   :  { %459 = vadd.xlane.f32.xlu1 %v458_v46 }
 0x44f   :  { %v418_v47 = vpop.xlane.xlu0 %417  ;;  %v424_v48 = vpop.xlane.xlu1 %423 }
 0x450   :  { %v436_v51 = vsub.f32 %v303_v11, %v418_v47  ;;  %v438_v42 = vsub.f32 %v353_v12, %v424_v48 }
 0x452   :  { %v446_v52 = vmul.f32 1.442695, %v436_v51  ;;  %v450_v53 = vmul.f32 1.442695, %v438_v42 }
 0x453   :  { %v421_v55 = vpop.xlane.xlu0 %420 }
 0x454   :  { %2691 = vpow2.f32 %v446_v52  ;;  %v437_v56 = vsub.f32 %v306_v20, %v421_v55 }
 0x455   :  { %2693 = vpow2.f32 %v450_v53 }
 0x456   :  { %v448_v57 = vmul.f32 1.442695, %v437_v56 }
 0x457   :  { %v430_v58 = vpop.xlane.xlu1 %429  ;;  %v427_v59 = vpop.xlane.xlu0 %426 }
 0x458   :  { %2695 = vpow2.f32 %v448_v57  ;;  %v440_v60 = vsub.f32 %v403_v26, %v430_v58  ;;  %v439_v61 = vsub.f32 %v356_v23, %v427_v59  ;;  %v2653_v57 = vld [vmem:[%s3420_s6 + $0x8] sm:$0xff]   ;;  %v2654_v59 = vld [vmem:[%s3420_s6] sm:$0xff]  }
 0x45a   :  { %v454_v62 = vmul.f32 1.442695, %v440_v60  ;;  %v452_v0 = vmul.f32 1.442695, %v439_v61 }
 0x45b   :  { %v503_v1 = vpop.permute.xlu1 %502  ;;  %v433_v2 = vpop.xlane.xlu0 %432 }
 0x45c   :  { %2697 = vpow2.f32 %v454_v62  ;;  %v441_v4 = vsub.f32 %v406_v33, %v433_v2  ;;  %2444 = vmatpush3.bf16.msra.mxu1 %v503_v1 }
 0x45d   :  { %2699 = vpow2.f32 %v452_v0  ;;  %2455 = vmatprep.subr.bf16.mxu1 %v2787_v14 }
 0x45e   :  { %v456_v5 = vmul.f32 1.442695, %v441_v4 }
 0x460   :  { %2701 = vpow2.f32 %v456_v5 }
 0x461   :  { %v2692_v6 = vpop.eup %2691 }
 0x462   :  { %v464_v7 = vsel %vm409_vm3, %v2692_v6, 0.0  ;;  %v2694_v8 = vpop.eup %2693 }
 0x463   :  { %465 = vadd.xlane.f32.xlu1 %v464_v7  ;;  %v470_v10 = vsel %vm409_vm3, %v2694_v8, 0.0 }
 0x465   :  { %v2696_v9 = vpop.eup %2695 }
 0x466   :  { %v467_v11 = vsel %vm409_vm3, %v2696_v9, 0.0 }
 0x467   :  { %471 = vadd.xlane.f32.xlu1 %v470_v10  ;;  %468 = vadd.xlane.f32.xlu0 %v467_v11 }
 0x469   :  { %v2698_v12 = vpop.eup %2697 }
 0x46a   :  { %v2700_v13 = vpop.eup %2699  ;;  %v476_v15 = vsel %vm409_vm3, %v2698_v12, 0.0 }
 0x46b   :  { %477 = vadd.xlane.f32.xlu1 %v476_v15  ;;  %v473_v16 = vsel %vm409_vm3, %v2700_v13, 0.0 }
 0x46c   :  { %474 = vadd.xlane.f32.xlu0 %v473_v16 }
 0x46d   :  { %v2702_v17 = vpop.eup %2701 }
 0x46e   :  { %v479_v18 = vsel %vm409_vm3, %v2702_v17, 0.0 }
 0x470   :  { %480 = vadd.xlane.f32.xlu0 %v479_v18  ;;  %v2239_v18 = vld [vmem:[%s3421_s7] ss:$0 sm:$0xff] }
 0x47c   :  { %596 = vrot.lane.b32.xlu1 %v2951_v49, %s2793_s1 }
 0x480   :  { %643 = vrot.lane.b32.xlu1 %v2959_v54, %s2793_s1 }
 0x481   :  { %v463_v19 = vpop.xlane.xlu0 %462 }
 0x482   :  { %2703 = vrcp.f32 %v463_v19 }
 0x486   :  { %549 = vrot.lane.b32.xlu0 %v2953_v50, %s2793_s1 }
 0x48c   :  { %v460_v20 = vpop.xlane.xlu1 %459 }
 0x48d   :  { %2705 = vrcp.f32 %v460_v20 }
 0x48f   :  { %v2704_v21 = vpop.eup %2703 }
 0x490   :  { %v491_v24 = vmul.f32 %v2704_v21, %v2688_v43 }
 0x49a   :  { %v2706_v22 = vpop.eup %2705 }
 0x49b   :  { %v490_v23 = vmul.f32 %v2706_v22, %v2690_v45 }
 0x49d   :  { %v498_v25 = vpack.c.bf16 %v491_v24, %v490_v23 }
 0x49f   :  { %2446 = vmatmul.mubr.msk.bf16.vlgmr.msra.gmra.mxu1 %vm409_vm3, %v498_v25 }
 0x4a0   :  { %2457 = vmatprep.mubr.msk.bf16.mxu1 %vm2788_vm1, %v2787_v14 }
 0x4ec   :  { %v466_v49 = vpop.xlane.xlu1 %465 }
 0x4ed   :  { %2707 = vrcp.f32 %v466_v49 }
 0x4f0   :  { %v472_v54 = vpop.xlane.xlu1 %471  ;;  %v469_v26 = vpop.xlane.xlu0 %468 }
 0x4f1   :  { %2709 = vrcp.f32 %v469_v26 }
 0x4f2   :  { %2711 = vrcp.f32 %v472_v54 }
 0x4f4   :  { %v478_v50 = vpop.xlane.xlu1 %477 }
 0x4f5   :  { %v475_v27 = vpop.xlane.xlu0 %474 }
 0x4f6   :  { %2713 = vrcp.f32 %v475_v27 }
 0x4f7   :  { %2715 = vrcp.f32 %v478_v50 }
 0x4f8   :  { %v597_v28 = vpop.permute.xlu1 %596 }
 0x4f9   :  { %v481_v29 = vpop.xlane.xlu0 %480  ;;  %2456 = vmatpush3.bf16.msra.mxu1 %v597_v28 }
 0x4fa   :  { %2717 = vrcp.f32 %v481_v29  ;;  %2467 = vmatprep.subr.bf16.mxu1 %v2787_v14  ;;  %v2708_v30 = vpop.eup %2707 }
 0x4fb   :  { %v492_v35 = vmul.f32 %v2708_v30, %v2692_v6 }
 0x4fc   :  { %v644_v40 = vpop.permute.xlu1 %643 }
 0x4fd   :  { %v550_v33 = vpop.permute.xlu0 %549 }
 0x4fe   :  { %2450 = vmatpush3.bf16.msra.mxu0 %v550_v33  ;;  %v2710_v34 = vpop.eup %2709 }
 0x4ff   :  { %2461 = vmatprep.subr.bf16.mxu0 %v2787_v14  ;;  %v493_v36 = vmul.f32 %v2710_v34, %v2696_v9  ;;  %v2712_v37 = vpop.eup %2711 }
 0x500   :  { %v494_v41 = vmul.f32 %v2712_v37, %v2694_v8  ;;  %v2656_v37 = vld [vmem:[%s3422_s10] sm:$0xff]  }
 0x501   :  { %v499_v38 = vpack.c.bf16 %v493_v36, %v492_v35 }
 0x503   :  { %v2714_v39 = vpop.eup %2713  ;;  %2452 = vmatmul.mubr.msk.bf16.vlgmr.msra.gmra.mxu0 %vm409_vm3, %v499_v38 }
 0x504   :  { %v495_v43 = vmul.f32 %v2714_v39, %v2700_v13  ;;  %v2716_v44 = vpop.eup %2715  ;;  %2462 = vmatpush3.bf16.msra.mxu0 %v644_v40  ;;  %2463 = vmatprep.mubr.msk.bf16.mxu0 %vm2788_vm1, %v2787_v14 }
 0x505   :  { %2475 = vmatprep.subr.bf16.mxu0 %v2787_v14  ;;  %v496_v47 = vmul.f32 %v2716_v44, %v2698_v12 }
 0x506   :  { %v500_v45 = vpack.c.bf16 %v495_v43, %v494_v41 }
 0x507   :  { %v2718_v46 = vpop.eup %2717 }
 0x508   :  { %2458 = vmatmul.mubr.msk.bf16.vlgmr.msra.gmra.mxu1 %vm409_vm3, %v500_v45  ;;  %v497_v48 = vmul.f32 %v2718_v46, %v2702_v17 }
 0x509   :  { %2471 = vmatprep.mubr.msk.bf16.mxu1 %vm2788_vm1, %v2787_v14  ;;  %2468 = vmatpush3.bf16.msra.mxu1 %v2653_v57 }
 0x50a   :  { %v501_v51 = vpack.c.bf16 %v497_v48, %v496_v47  ;;  %2469 = vmatprep.subr.bf16.mxu1 %v2787_v14  ;;  %v2243_v47 = vld [vmem:[%s3423_s8] ss:$0 sm:$0xff] }
 0x50c   :  { %2464 = vmatmul.mubr.msk.bf16.vlgmr.msra.gmra.mxu0 %vm409_vm3, %v501_v51 }
 0x50d   :  { %2479 = vmatprep.mubr.msk.bf16.mxu0 %vm2788_vm1, %v2787_v14  ;;  %2470 = vmatpush3.bf16.msra.mxu1 %v2654_v59  ;;  %v2658_v59 = vld [vmem:[%s3425_s12 + $0x30] sm:$0xff]  }
 0x50e   :  { %2483 = vmatprep.subr.bf16.mxu1 %v2787_v14 }
 0x55f   :  { %v542_v42 = vpop.f32.mrf.mxu1 }
 0x560   :  { %690 = vst.msk [vmem:[#allocation2] sm:$0xff] %vm211_vm2, %v542_v42 }
 0x561   :  { %v2447_v52 = vpop.f32.mrf.mxu1 }
 0x562   :  { %v2244_v52 = vld [vmem:[%s3424_s9] ss:$0 sm:$0xff] }
 0x563   :  { %v545_v53 = vpop.f32.mrf.mxu1 }
 0x564   :  { %691 = vst.msk [vmem:[#allocation2 + $0x8] sm:$0xff] %vm211_vm2, %v545_v53 }
 0x565   :  { %v2448_v55 = vpop.f32.mrf.mxu1 }
 0x5c3   :  { %v589_v56 = vpop.f32.mrf.mxu0 }
 0x5c4   :  { %694 = vrot.lane.b32.xlu1 %v589_v56, %s2794_s0 }
 0x5c5   :  { %v2453_v58 = vpop.f32.mrf.mxu0 }
 0x5c6   :  { %v2657_v58 = vld [vmem:[%s3425_s12 + $0x38] sm:$0xff]  }
 0x5c7   :  { %v592_v60 = vpop.f32.mrf.mxu0 }
 0x5c8   :  { %v636_v61 = vpop.f32.mrf.mxu1  ;;  %696 = vrot.lane.b32.xlu0 %v592_v60, %s2794_s0  ;;  %v2659_v60 = vld [vmem:[%s3425_s12 + $0x28] sm:$0xff]  }
 0x5c9   :  { %705 = vrot.lane.b32.xlu1 %v636_v61, %s2795_s28  ;;  %v2454_v62 = vpop.f32.mrf.mxu0  ;;  %v2660_v61 = vld [vmem:[%s3425_s12 + $0x20] sm:$0xff]  }
 0x5ca   :  { %v2459_v0 = vpop.f32.mrf.mxu1  ;;  %v2661_v62 = vld [vmem:[%s3425_s12 + $0x18] sm:$0xff]  }
 0x5cb   :  { %v2662_v0 = vld [vmem:[%s3425_s12 + $0x10] sm:$0xff]  }
 0x5cc   :  { %v639_v1 = vpop.f32.mrf.mxu1  ;;  %v683_v2 = vpop.f32.mrf.mxu0 }
 0x5cd   :  { %716 = vrot.lane.b32.xlu1 %v683_v2, %s3438_s5  ;;  %707 = vrot.lane.b32.xlu0 %v639_v1, %s2795_s28  ;;  %v2663_v1 = vld [vmem:[%s3425_s12 + $0x8] sm:$0xff]   ;;  %v2664_v2 = vld [vmem:[%s3425_s12] sm:$0xff]  }
 0x5ce   :  { %v2460_v4 = vpop.f32.mrf.mxu1  ;;  %v2465_v5 = vpop.f32.mrf.mxu0 }
 0x5cf   :  { %v2245_v4 = vld [vmem:[%s3426_s11] ss:$0 sm:$0xff] }
 0x5d0   :  { %v686_v6 = vpop.f32.mrf.mxu0 }
 0x5d1   :  { %718 = vrot.lane.b32.xlu0 %v686_v6, %s3438_s5 }
 0x5d2   :  { %v2466_v7 = vpop.f32.mrf.mxu0 }
 0x636   :  { %v695_v8 = vpop.permute.xlu1 %694 }
 0x637   :  { %701 = vst.msk [vmem:[#allocation2] sm:$0xff] %vm700_vm4, %v695_v8 }
 0x63a   :  { %v697_v9 = vpop.permute.xlu0 %696 }
 0x63b   :  { %v706_v10 = vpop.permute.xlu1 %705  ;;  %702 = vst.msk [vmem:[#allocation2 + $0x8] sm:$0xff] %vm700_vm4, %v697_v9 }
 0x63c   :  { %712 = vst.msk [vmem:[#allocation2] sm:$0xff] %vm711_vm5, %v706_v10 }
 0x63f   :  { %v717_v11 = vpop.permute.xlu1 %716  ;;  %v708_v12 = vpop.permute.xlu0 %707 }
 0x640   :  { %723 = vst.msk [vmem:[#allocation2] sm:$0xff] %vm722_vm6, %v717_v11 }
 0x641   :  { %713 = vst.msk [vmem:[#allocation2 + $0x8] sm:$0xff] %vm711_vm5, %v708_v12 }
 0x643   :  { %v719_v13 = vpop.permute.xlu0 %718 }
 0x644   :  { %724 = vst.msk [vmem:[#allocation2 + $0x8] sm:$0xff] %vm722_vm6, %v719_v13 }
 0x647   :  { %v725_v15 = vld [vmem:[#allocation2] sm:$0xff] }
 0x64b   :  { %v726_v16 = vld [vmem:[#allocation2 + $0x8] sm:$0xff] }
 0x64c   :  { %v731_v17 = vpack.c.bf16 %v726_v16, %v725_v15 }
 0x64e   :  { %2472 = vmatmul.mubr.msk.bf16.vlgmr.msra.gmra.mxu1 %vm70_vm0, %v731_v17 }
 0x64f   :  { %2499 = vmatprep.mubr.msk.bf16.mxu1 %vm2788_vm1, %v2787_v14  ;;  %2484 = vmatpush3.bf16.msra.mxu1 %v2657_v58 }
 0x650   :  { %2485 = vmatprep.subr.bf16.mxu1 %v2787_v14 }
 0x653   :  { %2486 = vmatpush3.bf16.msra.mxu1 %v2658_v59 }
 0x654   :  { %2487 = vmatprep.subr.bf16.mxu1 %v2787_v14 }
 0x657   :  { %2488 = vmatpush3.bf16.msra.mxu1 %v2659_v60 }
 0x658   :  { %2489 = vmatprep.subr.bf16.mxu1 %v2787_v14 }
 0x65b   :  { %2490 = vmatpush3.bf16.msra.mxu1 %v2660_v61 }
 0x65c   :  { %2491 = vmatprep.subr.bf16.mxu1 %v2787_v14 }
 0x65f   :  { %2492 = vmatpush3.bf16.msra.mxu1 %v2661_v62  ;;  %v2258_v62 = vld [vmem:[%s3428_s14] ss:$0 sm:$0xff] }
 0x660   :  { %2493 = vmatprep.subr.bf16.mxu1 %v2787_v14 }
 0x663   :  { %2494 = vmatpush3.bf16.msra.mxu1 %v2662_v0 }
 0x664   :  { %2495 = vmatprep.subr.bf16.mxu1 %v2787_v14 }
 0x667   :  { %2496 = vmatpush3.bf16.msra.mxu1 %v2663_v1 }
 0x668   :  { %2497 = vmatprep.subr.bf16.mxu1 %v2787_v14 }
 0x66b   :  { %2498 = vmatpush3.bf16.msra.mxu1 %v2664_v2 }
 0x66c   :  { %2529 = vmatprep.subr.bf16.mxu1 %v2787_v14 }
 0x70e   :  { %v788_v19 = vpop.f32.mrf.mxu1 }
 0x70f   :  { %v789_v20 = vadd.f32 %v2239_v18, %v788_v19 }
 0x710   :  { %v2473_v21 = vpop.f32.mrf.mxu1 }
 0x711   :  { %v795_v22 = vadd.f32 %v789_v20, %v2932_v31 }
 0x712   :  { %v791_v23 = vpop.f32.mrf.mxu1 }
 0x713   :  { %v792_v24 = vadd.f32 %v2239_v18, %v791_v23  ;;  %v799_v25 = vsel %vm70_vm0, %v795_v22, 0.0 }
 0x714   :  { %800 = vadd.xlane.f32.xlu1 %v799_v25  ;;  %v2474_v49 = vpop.f32.mrf.mxu1 }
 0x715   :  { %v796_v54 = vadd.f32 %v792_v24, %v2934_v32  ;;  %v2655_v32 = vld [vmem:[%s3422_s10 + $0x8] sm:$0xff]  }
 0x716   :  { %2476 = vmatpush3.bf16.msra.mxu0 %v2655_v32 }
 0x717   :  { %v802_v26 = vsel %vm70_vm0, %v796_v54, 0.0  ;;  %2477 = vmatprep.subr.bf16.mxu0 %v2787_v14 }
 0x718   :  { %803 = vadd.xlane.f32.xlu0 %v802_v26 }
 0x71a   :  { %2478 = vmatpush3.bf16.msra.mxu0 %v2656_v37 }
 0x71b   :  { %2503 = vmatprep.subr.bf16.mxu0 %v2787_v14 }
 0x79d   :  { %v801_v50 = vpop.xlane.xlu1 %800 }
 0x79e   :  { %v805_v27 = vmul.f32 0.03125, %v801_v50 }
 0x7a0   :  { %v807_v28 = vsub.f32 %v795_v22, %v805_v27 }
 0x7a1   :  { %v804_v29 = vpop.xlane.xlu0 %803 }
 0x7a2   :  { %v806_v30 = vmul.f32 0.03125, %v804_v29  ;;  %v809_v33 = vmul.f32 %v807_v28, %v807_v28 }
 0x7a4   :  { %v808_v34 = vsub.f32 %v796_v54, %v806_v30  ;;  %v811_v31 = vsel %vm70_vm0, %v809_v33, 0.0 }
 0x7a5   :  { %812 = vadd.xlane.f32.xlu0 %v811_v31 }
 0x7a6   :  { %v810_v35 = vmul.f32 %v808_v34, %v808_v34 }
 0x7a8   :  { %v814_v36 = vsel %vm70_vm0, %v810_v35, 0.0 }
 0x7a9   :  { %815 = vadd.xlane.f32.xlu0 %v814_v36 }
 0x82e   :  { %v813_v38 = vpop.xlane.xlu0 %812 }
 0x82f   :  { %v817_v39 = vmul.f32 0.03125, %v813_v38 }
 0x831   :  { %v819_v40 = vadd.f32 1e-12, %v817_v39 }
 0x832   :  { %v816_v41 = vpop.xlane.xlu0 %815 }
 0x833   :  { %2719 = vrsqrt.f32 %v819_v40  ;;  %v818_v43 = vmul.f32 0.03125, %v816_v41 }
 0x835   :  { %v820_v44 = vadd.f32 1e-12, %v818_v43 }
 0x837   :  { %2721 = vrsqrt.f32 %v820_v44 }
 0x840   :  { %v2720_v45 = vpop.eup %2719 }
 0x841   :  { %v823_v46 = vmul.f32 %v2720_v45, %v807_v28  ;;  %v2249_v28 = vld [vmem:[%s3427_s13] ss:$0 sm:$0xff] }
 0x843   :  { %v831_v42 = vmul.f32 %v2243_v47, %v823_v46 }
 0x844   :  { %v2722_v48 = vpop.eup %2721 }
 0x845   :  { %v824_v51 = vmul.f32 %v2722_v48, %v808_v34  ;;  %v3093_v55 = vadd.f32 %v2244_v52, %v831_v42  ;;  %v2665_v42 = vld [vmem:[%s3446_s26 + $0x18] sm:$0xff]  }
 0x847   :  { %v832_v53 = vmul.f32 %v2243_v47, %v824_v51 }
 0x849   :  { %v3095_v56 = vadd.f32 %v2244_v52, %v832_v53  ;;  %v2666_v52 = vld [vmem:[%s3446_s26 + $0x10] sm:$0xff]  }
 0x84b   :  { %v845_v57 = vpack.c.bf16 %v3095_v56, %v3093_v55 }
 0x84d   :  { %2480 = vmatmul.mubr.msk.bf16.vlgmr.msra.gmra.mxu0 %vm70_vm0, %v845_v57 }
 0x84e   :  { %2507 = vmatprep.mubr.msk.bf16.mxu0 %vm2788_vm1, %v2787_v14  ;;  %2504 = vmatpush3.bf16.msra.mxu0 %v2665_v42 }
 0x84f   :  { %2505 = vmatprep.subr.bf16.mxu0 %v2787_v14 }
 0x852   :  { %2506 = vmatpush3.bf16.msra.mxu0 %v2666_v52 }
 0x853   :  { %2511 = vmatprep.subr.bf16.mxu0 %v2787_v14 }
 0x90d   :  { %v902_v5 = vpop.f32.mrf.mxu0 }
 0x90e   :  { %v903_v6 = vadd.f32 %v2245_v4, %v902_v5 }
 0x90f   :  { %v2481_v7 = vpop.f32.mrf.mxu0 }
 0x910   :  { %v909_v8 = vmul.f32 %v903_v6, %v903_v6 }
 0x911   :  { %v905_v9 = vpop.f32.mrf.mxu0 }
 0x912   :  { %v911_v10 = vmul.f32 %v909_v8, %v903_v6  ;;  %v906_v11 = vadd.f32 %v2245_v4, %v905_v9  ;;  %v2259_v4 = vld [vmem:[%s3429_s15] ss:$0 sm:$0xff] }
 0x913   :  { %v2482_v12 = vpop.f32.mrf.mxu0 }
 0x914   :  { %v913_v13 = vmul.f32 0.044715, %v911_v10  ;;  %v910_v15 = vmul.f32 %v906_v11, %v906_v11  ;;  %v2265_v10 = vld [vmem:[%s3449_s24 + $0x1] ss:$0 sm:$0xff] }
 0x916   :  { %v915_v16 = vadd.f32 %v913_v13, %v903_v6  ;;  %v912_v17 = vmul.f32 %v910_v15, %v906_v11 }
 0x918   :  { %v917_v18 = vmul.f32 0.7978846, %v915_v16  ;;  %v914_v19 = vmul.f32 0.044715, %v912_v17 }
 0x91a   :  { %2723 = vtanh.f32 %v917_v18  ;;  %v916_v20 = vadd.f32 %v914_v19, %v906_v11 }
 0x91c   :  { %v918_v21 = vmul.f32 0.7978846, %v916_v20 }
 0x91e   :  { %2725 = vtanh.f32 %v918_v21 }
 0x927   :  { %v2724_v22 = vpop.eup %2723 }
 0x928   :  { %v921_v23 = vadd.f32 1.0, %v2724_v22 }
 0x92a   :  { %v923_v25 = vmul.f32 0.5, %v921_v23 }
 0x92b   :  { %v2726_v24 = vpop.eup %2725 }
 0x92c   :  { %v922_v49 = vadd.f32 1.0, %v2726_v24  ;;  %v925_v26 = vmul.f32 %v923_v25, %v903_v6 }
 0x92e   :  { %v924_v54 = vmul.f32 0.5, %v922_v49 }
 0x930   :  { %v926_v50 = vmul.f32 %v924_v54, %v906_v11 }
 0x932   :  { %v943_v27 = vpack.c.bf16 %v926_v50, %v925_v26 }
 0x934   :  { %2500 = vmatmul.mubr.bf16.vlgmr.msra.gmra.mxu1 %v943_v27 }
 0x935   :  { %2531 = vmatprep.mubr.msk.bf16.mxu1 %vm2788_vm1, %v2787_v14 }
 0x9f4   :  { %v1033_v29 = vpop.f32.mrf.mxu1 }
 0x9f5   :  { %v1034_v30 = vadd.f32 %v2249_v28, %v1033_v29 }
 0x9f6   :  { %v2501_v33 = vpop.f32.mrf.mxu1 }
 0x9f7   :  { %v1040_v34 = vadd.f32 %v1034_v30, %v3093_v55 }
 0x9f8   :  { %v1036_v31 = vpop.f32.mrf.mxu1 }
 0x9f9   :  { %v1037_v35 = vadd.f32 %v2249_v28, %v1036_v31  ;;  %v1044_v36 = vsel %vm70_vm0, %v1040_v34, 0.0 }
 0x9fa   :  { %1045 = vadd.xlane.f32.xlu1 %v1044_v36  ;;  %v2502_v32 = vpop.f32.mrf.mxu1 }
 0x9fb   :  { %v1041_v37 = vadd.f32 %v1037_v35, %v3095_v56 }
 0x9fd   :  { %v1047_v38 = vsel %vm70_vm0, %v1041_v37, 0.0 }
 0x9fe   :  { %1048 = vadd.xlane.f32.xlu0 %v1047_v38 }
 0xa83   :  { %v1046_v39 = vpop.xlane.xlu1 %1045 }
 0xa84   :  { %v1050_v40 = vmul.f32 0.03125, %v1046_v39 }
 0xa86   :  { %v1052_v41 = vsub.f32 %v1040_v34, %v1050_v40 }
 0xa87   :  { %v1049_v43 = vpop.xlane.xlu0 %1048 }
 0xa88   :  { %v1051_v44 = vmul.f32 0.03125, %v1049_v43  ;;  %v1054_v45 = vmul.f32 %v1052_v41, %v1052_v41 }
 0xa8a   :  { %v1053_v46 = vsub.f32 %v1041_v37, %v1051_v44  ;;  %v1056_v47 = vsel %vm70_vm0, %v1054_v45, 0.0 }
 0xa8b   :  { %1057 = vadd.xlane.f32.xlu1 %v1056_v47 }
 0xa8c   :  { %v1055_v48 = vmul.f32 %v1053_v46, %v1053_v46 }
 0xa8e   :  { %v1059_v51 = vsel %vm70_vm0, %v1055_v48, 0.0 }
 0xa8f   :  { %1060 = vadd.xlane.f32.xlu0 %v1059_v51 }
 0xb14   :  { %v1058_v53 = vpop.xlane.xlu1 %1057 }
 0xb15   :  { %v1062_v55 = vmul.f32 0.03125, %v1058_v53 }
 0xb17   :  { %v1064_v56 = vadd.f32 1e-12, %v1062_v55 }
 0xb18   :  { %v1061_v57 = vpop.xlane.xlu0 %1060 }
 0xb19   :  { %2727 = vrsqrt.f32 %v1064_v56  ;;  %v1063_v58 = vmul.f32 0.03125, %v1061_v57 }
 0xb1b   :  { %v1065_v59 = vadd.f32 1e-12, %v1063_v58 }
 0xb1d   :  { %2729 = vrsqrt.f32 %v1065_v59 }
 0xb26   :  { %v2728_v60 = vpop.eup %2727 }
 0xb27   :  { %v1068_v61 = vmul.f32 %v2728_v60, %v1052_v41 }
 0xb29   :  { %v1076_v2 = vmul.f32 %v2258_v62, %v1068_v61 }
 0xb2a   :  { %v2730_v0 = vpop.eup %2729 }
 0xb2b   :  { %v1069_v1 = vmul.f32 %v2730_v0, %v1053_v46  ;;  %v3162_v6 = vadd.f32 %v2259_v4, %v1076_v2 }
 0xb2d   :  { %v1077_v5 = vmul.f32 %v2258_v62, %v1069_v1 }
 0xb2f   :  { %v3164_v7 = vadd.f32 %v2259_v4, %v1077_v5 }
 0xb31   :  { %v1091_v8 = vpack.c.bf16 %v3164_v7, %v3162_v6 }
 0xb33   :  { %2508 = vmatmul.mubr.msk.bf16.vlgmr.msra.gmra.mxu0 %vm70_vm0, %v1091_v8 }
 0xb34   :  { %2513 = vmatprep.mubr.msk.bf16.mxu0 %vm2788_vm1, %v2787_v14 }
 0xbf3   :  { %v1149_v9 = vpop.f32.mrf.mxu0 }
 0xbf4   :  { %v1150_v13 = vadd.f32 %v2265_v10, %v1149_v9 }
 0xbf5   :  { %v2509_v11 = vpop.f32.mrf.mxu0 }
 0xbf7   :  { %v1152_v12 = vpop.f32.mrf.mxu0 }
 0xbf8   :  { %v1153_v15 = vadd.f32 %v2265_v10, %v1152_v12 }
 0xbf9   :  { %v2510_v16 = vpop.f32.mrf.mxu0 }
 0xbfa   :  { %v2641_v17 = vpack.i.bf16 %v1153_v15, %v1150_v13  ;;  %v3177_v18 = vpack.c.bf16 %v1153_v15, %v1150_v13 }
 0xbfc   :  { %2642 = vrot.lane.b32.xlu0 %v2641_v17, %s2789_s2  ;;  %2637 = vrot.lane.b32.xlu1 %v2641_v17, %s2790_s25 }
 0xc00   :  { %2647 = vrot.lane.b32.xlu1 %v2641_v17, %s2791_s3 }
 0xc04   :  { %1181 = vrot.lane.b32.xlu1 %v3177_v18, %s2792_s27 }
 0xc6e   :  { %v2643_v19 = vpop.permute.xlu0 %2642  ;;  %v2638_v20 = vpop.permute.xlu1 %2637 }
 0xc6f   :  { %v2645_v21 = vunpack.i.h.bf16 %v2643_v19  ;;  %v2644_v22 = vunpack.i.l.bf16 %v2643_v19  ;;  %v2640_v23 = vunpack.i.h.bf16 %v2638_v20  ;;  %v2639_v24 = vunpack.i.l.bf16 %v2638_v20 }
 0xc71   :  { %v3181_v25 = vpack.c.bf16 %v2645_v21, %v2644_v22  ;;  %v3183_v49 = vpack.c.bf16 %v2640_v23, %v2639_v24 }
 0xc72   :  { %v2648_v54 = vpop.permute.xlu1 %2647 }
 0xc73   :  { %v2650_v26 = vunpack.i.h.bf16 %v2648_v54  ;;  %v2649_v50 = vunpack.i.l.bf16 %v2648_v54  ;;  %1281 = vrot.lane.b32.xlu0 %v3181_v25, %s2792_s27  ;;  %1231 = vrot.lane.b32.xlu1 %v3183_v49, %s2792_s27 }
 0xc75   :  { %v3189_v27 = vpack.c.bf16 %v2650_v26, %v2649_v50 }
 0xc76   :  { %v1182_v28 = vpop.permute.xlu1 %1181 }
 0xc77   :  { %v1187_v29 = vsel %vm211_vm2, %v1182_v28, 0  ;;  %1331 = vrot.lane.b32.xlu1 %v3189_v27, %s2792_s27  ;;  %s3450_s27 = smov 24  }
 0xc78   :  { %2512 = vmatpush3.bf16.xpose.msra.mxu0 %v1187_v29 }
 0xc79   :  { %2517 = vmatprep.subr.bf16.mxu0 %v2787_v14 }
 0xc7f   :  { %2514 = vmatmul.mubr.msk.bf16.vlgmr.msra.gmra.mxu0 %vm211_vm2, %v3177_v18 }
 0xc80   :  { %2519 = vmatprep.mubr.msk.bf16.mxu0 %vm2788_vm1, %v2787_v14 }
 0xce5   :  { %v1232_v30 = vpop.permute.xlu1 %1231  ;;  %v1282_v35 = vpop.permute.xlu0 %1281 }
 0xce6   :  { %v1237_v33 = vsel %vm211_vm2, %v1232_v30, 0  ;;  %v1287_v36 = vsel %vm211_vm2, %v1282_v35, 0 }
 0xce7   :  { %2518 = vmatpush3.bf16.xpose.msra.mxu0 %v1237_v33 }
 0xce8   :  { %2523 = vmatprep.subr.bf16.mxu0 %v2787_v14 }
 0xce9   :  { %v1332_v34 = vpop.permute.xlu1 %1331 }
 0xcea   :  { %v1337_v31 = vsel %vm211_vm2, %v1332_v34, 0 }
 0xceb   :  { %2530 = vmatpush3.bf16.xpose.msra.mxu1 %v1337_v31 }
 0xcec   :  { %2541 = vmatprep.subr.bf16.mxu1 %v2787_v14 }
 0xcee   :  { %2520 = vmatmul.mubr.msk.bf16.vlgmr.msra.gmra.mxu0 %vm211_vm2, %v3183_v49 }
 0xcef   :  { %2524 = vmatpush3.bf16.xpose.msra.mxu0 %v1287_v36  ;;  %2525 = vmatprep.mubr.msk.bf16.mxu0 %vm2788_vm1, %v2787_v14 }
 0xcf0   :  { %2535 = vmatprep.subr.bf16.mxu0 %v2787_v14 }
 0xcf2   :  { %2532 = vmatmul.mubr.msk.bf16.vlgmr.msra.gmra.mxu1 %vm211_vm2, %v3189_v27 }
 0xcf3   :  { %2543 = vmatprep.mubr.msk.bf16.mxu1 %vm2788_vm1, %v2787_v14 }
 0xcf6   :  { %2526 = vmatmul.mubr.msk.bf16.vlgmr.msra.gmra.mxu0 %vm211_vm2, %v3181_v25 }
 0xcf7   :  { %2537 = vmatprep.mubr.msk.bf16.mxu0 %vm2788_vm1, %v2787_v14 }
 0xd3f   :  { %v1223_v32 = vpop.f32.mrf.mxu0 }
 0xd40   :  { %v1224_v37 = vadd.f32 %v1223_v32, %v2990_v63 }
 0xd41   :  { %v2515_v38 = vpop.f32.mrf.mxu0 }
 0xd42   :  { %v1380_v39 = vsel %vm409_vm3, %v1224_v37, -inf }
 0xd43   :  { %1381 = vmax.xlane.f32.xlu0 %v1380_v39  ;;  %v1226_v40 = vpop.f32.mrf.mxu0 }
 0xd44   :  { %v1227_v41 = vadd.f32 %v1226_v40, %v2996_v3 }
 0xd45   :  { %v2516_v43 = vpop.f32.mrf.mxu0 }
 0xd46   :  { %v1383_v44 = vsel %vm409_vm3, %v1227_v41, -inf }
 0xd47   :  { %1384 = vmax.xlane.f32.xlu1 %v1383_v44 }
 0xdae   :  { %v1273_v45 = vpop.f32.mrf.mxu0 }
 0xdaf   :  { %v1274_v46 = vadd.f32 %v1273_v45, %v2990_v63 }
 0xdb0   :  { %v2521_v47 = vpop.f32.mrf.mxu0 }
 0xdb1   :  { %v1386_v48 = vsel %vm409_vm3, %v1274_v46, -inf }
 0xdb2   :  { %1387 = vmax.xlane.f32.xlu0 %v1386_v48  ;;  %v1276_v51 = vpop.f32.mrf.mxu0  ;;  %v1373_v42 = vpop.f32.mrf.mxu1 }
 0xdb3   :  { %v1277_v52 = vadd.f32 %v1276_v51, %v2996_v3  ;;  %v1374_v62 = vadd.f32 %v1373_v42, %v2990_v63 }
 0xdb4   :  { %v2522_v53 = vpop.f32.mrf.mxu0  ;;  %v2533_v55 = vpop.f32.mrf.mxu1 }
 0xdb5   :  { %v1389_v56 = vsel %vm409_vm3, %v1277_v52, -inf  ;;  %v1398_v9 = vsel %vm409_vm3, %v1374_v62, -inf }
 0xdb6   :  { %1390 = vmax.xlane.f32.xlu0 %v1389_v56  ;;  %v1323_v57 = vpop.f32.mrf.mxu0  ;;  %v1376_v58 = vpop.f32.mrf.mxu1 }
 0xdb7   :  { %v1324_v59 = vadd.f32 %v1323_v57, %v2990_v63  ;;  %v1377_v5 = vadd.f32 %v1376_v58, %v2996_v3 }
 0xdb8   :  { %v2527_v60 = vpop.f32.mrf.mxu0  ;;  %v2534_v61 = vpop.f32.mrf.mxu1 }
 0xdb9   :  { %v1392_v0 = vsel %vm409_vm3, %v1324_v59, -inf  ;;  %v1401_v10 = vsel %vm409_vm3, %v1377_v5, -inf }
 0xdba   :  { %1393 = vmax.xlane.f32.xlu0 %v1392_v0  ;;  %v1326_v1 = vpop.f32.mrf.mxu0 }
 0xdbb   :  { %v3229_v2 = vadd.f32 %v1326_v1, %v2996_v3 }
 0xdbc   :  { %v2528_v4 = vpop.f32.mrf.mxu0 }
 0xdbd   :  { %v1395_v8 = vsel %vm409_vm3, %v3229_v2, -inf }
 0xdbe   :  { %1396 = vmax.xlane.f32.xlu1 %v1395_v8  ;;  %1399 = vmax.xlane.f32.xlu0 %v1398_v9 }
 0xdc2   :  { %1402 = vmax.xlane.f32.xlu1 %v1401_v10 }
 0xdcc   :  { %v1382_v63 = vpop.xlane.xlu0 %1381 }
 0xdcd   :  { %v1404_v11 = vsub.f32 %v1224_v37, %v1382_v63 }
 0xdcf   :  { %v1412_v12 = vmul.f32 1.442695, %v1404_v11 }
 0xdd0   :  { %v1385_v13 = vpop.xlane.xlu1 %1384 }
 0xdd1   :  { %2731 = vpow2.f32 %v1412_v12  ;;  %v1405_v15 = vsub.f32 %v1227_v41, %v1385_v13 }
 0xdd3   :  { %v1414_v16 = vmul.f32 1.442695, %v1405_v15 }
 0xdd5   :  { %2733 = vpow2.f32 %v1414_v16 }
 0xdde   :  { %v3236_v17 = vpop.eup %2731 }
 0xddf   :  { %v1428_v3 = vsel %vm409_vm3, %v3236_v17, 0.0 }
 0xde0   :  { %1429 = vadd.xlane.f32.xlu0 %v1428_v3 }
 0xde2   :  { %v3240_v19 = vpop.eup %2733 }
 0xde3   :  { %v1431_v20 = vsel %vm409_vm3, %v3240_v19, 0.0 }
 0xde4   :  { %1432 = vadd.xlane.f32.xlu1 %v1431_v20 }
 0xe3b   :  { %v1388_v21 = vpop.xlane.xlu0 %1387 }
 0xe3c   :  { %v1406_v22 = vsub.f32 %v1274_v46, %v1388_v21 }
 0xe3e   :  { %v1416_v23 = vmul.f32 1.442695, %v1406_v22 }
 0xe3f   :  { %v1391_v24 = vpop.xlane.xlu0 %1390 }
 0xe40   :  { %2735 = vpow2.f32 %v1416_v23  ;;  %v1407_v54 = vsub.f32 %v1277_v52, %v1391_v24 }
 0xe42   :  { %v1418_v26 = vmul.f32 1.442695, %v1407_v54 }
 0xe43   :  { %v1394_v50 = vpop.xlane.xlu0 %1393 }
 0xe44   :  { %2737 = vpow2.f32 %v1418_v26  ;;  %v1408_v28 = vsub.f32 %v1324_v59, %v1394_v50 }
 0xe46   :  { %v1420_v31 = vmul.f32 1.442695, %v1408_v28 }
 0xe47   :  { %v1397_v29 = vpop.xlane.xlu1 %1396  ;;  %v1400_v30 = vpop.xlane.xlu0 %1399 }
 0xe48   :  { %v1410_v33 = vsub.f32 %v1374_v62, %v1400_v30  ;;  %v1409_v48 = vsub.f32 %v3229_v2, %v1397_v29 }
 0xe4a   :  { %v1424_v34 = vmul.f32 1.442695, %v1410_v33  ;;  %v1422_v51 = vmul.f32 1.442695, %v1409_v48 }
 0xe4b   :  { %v1403_v35 = vpop.xlane.xlu1 %1402 }
 0xe4c   :  { %v1411_v36 = vsub.f32 %v1377_v5, %v1403_v35  ;;  %2739 = vpow2.f32 %v1424_v34  ;;  %v2667_v35 = vld [vmem:[%s3420_s6 + $0x18] sm:$0xff]  }
 0xe4d   :  { %v2736_v32 = vpop.eup %2735  ;;  %2741 = vpow2.f32 %v1420_v31 }
 0xe4e   :  { %v1426_v37 = vmul.f32 1.442695, %v1411_v36  ;;  %v1434_v38 = vsel %vm409_vm3, %v2736_v32, 0.0  ;;  %v2668_v36 = vld [vmem:[%s3420_s6 + $0x10] sm:$0xff]  }
 0xe4f   :  { %1435 = vadd.xlane.f32.xlu0 %v1434_v38 }
 0xe50   :  { %2743 = vpow2.f32 %v1426_v37 }
 0xe51   :  { %v2738_v39 = vpop.eup %2737  ;;  %2745 = vpow2.f32 %v1422_v51 }
 0xe52   :  { %v1437_v40 = vsel %vm409_vm3, %v2738_v39, 0.0 }
 0xe53   :  { %1438 = vadd.xlane.f32.xlu1 %v1437_v40 }
 0xe59   :  { %v2740_v41 = vpop.eup %2739 }
 0xe5a   :  { %v1446_v43 = vsel %vm409_vm3, %v2740_v41, 0.0  ;;  %v3247_v44 = vpop.eup %2741 }
 0xe5b   :  { %1447 = vadd.xlane.f32.xlu0 %v1446_v43  ;;  %v1440_v47 = vsel %vm409_vm3, %v3247_v44, 0.0 }
 0xe5d   :  { %v2744_v45 = vpop.eup %2743 }
 0xe5e   :  { %v1449_v46 = vsel %vm409_vm3, %v2744_v45, 0.0  ;;  %v2746_v42 = vpop.eup %2745 }
 0xe5f   :  { %1450 = vadd.xlane.f32.xlu1 %v1449_v46  ;;  %1441 = vadd.xlane.f32.xlu0 %v1440_v47  ;;  %v1443_v52 = vsel %vm409_vm3, %v2746_v42, 0.0 }
 0xe69   :  { %v1430_v53 = vpop.xlane.xlu0 %1429 }
 0xe6d   :  { %v1433_v55 = vpop.xlane.xlu1 %1432 }
 0xe6e   :  { %2747 = vrcp.f32 %v1433_v55 }
 0xe70   :  { %1519 = vrot.lane.b32.xlu1 %v3183_v49, %s2793_s1 }
 0xe74   :  { %1566 = vrot.lane.b32.xlu1 %v3181_v25, %s2793_s1 }
 0xe75   :  { %1472 = vrot.lane.b32.xlu0 %v3177_v18, %s2793_s1 }
 0xe7b   :  { %v2748_v56 = vpop.eup %2747 }
 0xe7c   :  { %v1461_v62 = vmul.f32 %v2748_v56, %v3240_v19 }
 0xe98   :  { %1444 = vadd.xlane.f32.xlu1 %v1443_v52 }
 0xea9   :  { %1613 = vrot.lane.b32.xlu1 %v3189_v27, %s2793_s1 }
 0xed8   :  { %v1436_v49 = vpop.xlane.xlu0 %1435 }
 0xed9   :  { %2749 = vrcp.f32 %v1436_v49 }
 0xeda   :  { %2751 = vrcp.f32 %v1430_v53 }
 0xedc   :  { %v1439_v25 = vpop.xlane.xlu1 %1438 }
 0xedd   :  { %2753 = vrcp.f32 %v1439_v25 }
 0xee4   :  { %v1448_v18 = vpop.xlane.xlu0 %1447 }
 0xee6   :  { %v2750_v57 = vpop.eup %2749 }
 0xee7   :  { %v2752_v59 = vpop.eup %2751  ;;  %v1462_v0 = vmul.f32 %v2750_v57, %v2736_v32 }
 0xee8   :  { %v1451_v58 = vpop.xlane.xlu1 %1450  ;;  %v1442_v60 = vpop.xlane.xlu0 %1441  ;;  %v1460_v4 = vmul.f32 %v2752_v59, %v3236_v17 }
 0xee9   :  { %2755 = vrcp.f32 %v1451_v58 }
 0xeea   :  { %v2754_v61 = vpop.eup %2753  ;;  %v1468_v8 = vpack.c.bf16 %v1461_v62, %v1460_v4  ;;  %2757 = vrcp.f32 %v1448_v18 }
 0xeeb   :  { %v1463_v1 = vmul.f32 %v2754_v61, %v2738_v39  ;;  %2759 = vrcp.f32 %v1442_v60 }
 0xeec   :  { %v1520_v27 = vpop.permute.xlu1 %1519  ;;  %v1473_v2 = vpop.permute.xlu0 %1472 }
 0xeed   :  { %2542 = vmatpush3.bf16.msra.mxu1 %v1520_v27  ;;  %v1469_v5 = vpack.c.bf16 %v1463_v1, %v1462_v0  ;;  %2536 = vmatpush3.bf16.msra.mxu0 %v1473_v2 }
 0xeee   :  { %2553 = vmatprep.subr.bf16.mxu1 %v2787_v14  ;;  %2547 = vmatprep.subr.bf16.mxu0 %v2787_v14 }
 0xef0   :  { %2544 = vmatmul.mubr.msk.bf16.vlgmr.msra.gmra.mxu1 %vm409_vm3, %v1469_v5  ;;  %v1567_v9 = vpop.permute.xlu1 %1566  ;;  %2538 = vmatmul.mubr.msk.bf16.vlgmr.msra.gmra.mxu0 %vm409_vm3, %v1468_v8  ;;  %v2670_v8 = vld [vmem:[%s3422_s10 + $0x10] sm:$0xff]  }
 0xef1   :  { %2555 = vmatprep.mubr.msk.bf16.mxu1 %vm2788_vm1, %v2787_v14  ;;  %2548 = vmatpush3.bf16.msra.mxu0 %v1567_v9 }
 0xef2   :  { %2549 = vmatprep.mubr.msk.bf16.mxu0 %vm2788_vm1, %v2787_v14  ;;  %2559 = vmatprep.subr.bf16.mxu0 %v2787_v14 }
 0xef6   :  { %v2756_v10 = vpop.eup %2755 }
 0xef7   :  { %v2758_v11 = vpop.eup %2757  ;;  %v1467_v12 = vmul.f32 %v2756_v10, %v2744_v45 }
 0xef8   :  { %v1466_v15 = vmul.f32 %v2758_v11, %v2740_v41  ;;  %v2760_v17 = vpop.eup %2759 }
 0xef9   :  { %v1464_v19 = vmul.f32 %v2760_v17, %v3247_v44  ;;  %v2288_v17 = vld [vmem:[%s3423_s8 + $0x1] ss:$0 sm:$0xff] }
 0xefa   :  { %v1471_v16 = vpack.c.bf16 %v1467_v12, %v1466_v15 }
 0xf21   :  { %v1445_v63 = vpop.xlane.xlu1 %1444 }
 0xf22   :  { %2761 = vrcp.f32 %v1445_v63 }
 0xf25   :  { %v1614_v13 = vpop.permute.xlu1 %1613 }
 0xf26   :  { %2554 = vmatpush3.bf16.msra.mxu1 %v1614_v13 }
 0xf27   :  { %2567 = vmatprep.subr.bf16.mxu1 %v2787_v14 }
 0xf29   :  { %2556 = vmatmul.mubr.msk.bf16.vlgmr.msra.gmra.mxu1 %vm409_vm3, %v1471_v16 }
 0xf2a   :  { %2571 = vmatprep.mubr.msk.bf16.mxu1 %vm2788_vm1, %v2787_v14 }
 0xf2f   :  { %v2762_v3 = vpop.eup %2761 }
 0xf30   :  { %v1465_v20 = vmul.f32 %v2762_v3, %v2746_v42  ;;  %v2282_v42 = vld [vmem:[%s3421_s7 + $0x1] ss:$0 sm:$0xff] }
 0xf32   :  { %v1470_v21 = vpack.c.bf16 %v1465_v20, %v1464_v19 }
 0xf34   :  { %2550 = vmatmul.mubr.msk.bf16.vlgmr.msra.gmra.mxu0 %vm409_vm3, %v1470_v21  ;;  %v2289_v21 = vld [vmem:[%s3424_s9 + $0x1] ss:$0 sm:$0xff] }
 0xf35   :  { %2563 = vmatprep.mubr.msk.bf16.mxu0 %vm2788_vm1, %v2787_v14  ;;  %2560 = vmatpush3.bf16.msra.mxu0 %v2667_v35  ;;  %v2295_v35 = vld [vmem:[%s3426_s11 + $0x1] ss:$0 sm:$0xff] }
 0xf36   :  { %2561 = vmatprep.subr.bf16.mxu0 %v2787_v14 }
 0xf39   :  { %2562 = vmatpush3.bf16.msra.mxu0 %v2668_v36 }
 0xf3a   :  { %2575 = vmatprep.subr.bf16.mxu0 %v2787_v14 }
 0xfb0   :  { %v1559_v22 = vpop.f32.mrf.mxu1  ;;  %v1512_v23 = vpop.f32.mrf.mxu0 }
 0xfb1   :  { %1664 = vrot.lane.b32.xlu0 %v1559_v22, %s2794_s0  ;;  %1660 = vst.msk [vmem:[#allocation2] sm:$0xff] %vm211_vm2, %v1512_v23 }
 0xfb2   :  { %v2545_v24 = vpop.f32.mrf.mxu1  ;;  %v2539_v54 = vpop.f32.mrf.mxu0 }
 0xfb4   :  { %v1562_v26 = vpop.f32.mrf.mxu1  ;;  %v1515_v50 = vpop.f32.mrf.mxu0 }
 0xfb5   :  { %1666 = vrot.lane.b32.xlu1 %v1562_v26, %s2794_s0  ;;  %1661 = vst.msk [vmem:[#allocation2 + $0x8] sm:$0xff] %vm211_vm2, %v1515_v50  ;;  %v2671_v26 = vld [vmem:[%s3425_s12 + $0x78] sm:$0xff]   ;;  %v2672_v50 = vld [vmem:[%s3425_s12 + $0x70] sm:$0xff]  }
 0xfb6   :  { %v2546_v28 = vpop.f32.mrf.mxu1  ;;  %v2540_v29 = vpop.f32.mrf.mxu0 }
 0xfb7   :  { %v2673_v28 = vld [vmem:[%s3425_s12 + $0x68] sm:$0xff]   ;;  %v2674_v29 = vld [vmem:[%s3425_s12 + $0x60] sm:$0xff]  }
 0xfe9   :  { %v1653_v30 = vpop.f32.mrf.mxu1 }
 0xfeb   :  { %v2557_v33 = vpop.f32.mrf.mxu1 }
 0xfec   :  { %v2676_v33 = vld [vmem:[%s3425_s12 + $0x50] sm:$0xff]  }
 0xfed   :  { %v1656_v34 = vpop.f32.mrf.mxu1 }
 0xfef   :  { %v2558_v31 = vpop.f32.mrf.mxu1 }
 0xff0   :  { %v2678_v31 = vld [vmem:[%s3425_s12 + $0x40] sm:$0xff]  }
 0xff4   :  { %v1606_v32 = vpop.f32.mrf.mxu0 }
 0xff5   :  { %1674 = vrot.lane.b32.xlu0 %v1606_v32, %s2795_s28 }
 0xff6   :  { %v2551_v37 = vpop.f32.mrf.mxu0 }
 0xff8   :  { %v1609_v38 = vpop.f32.mrf.mxu0 }
 0xff9   :  { %1676 = vrot.lane.b32.xlu1 %v1609_v38, %s2795_s28  ;;  %1684 = vrot.lane.b32.xlu0 %v1653_v30, %s3450_s27  ;;  %v2675_v30 = vld [vmem:[%s3425_s12 + $0x58] sm:$0xff]  }
 0xffa   :  { %v2552_v39 = vpop.f32.mrf.mxu0 }
 0xffd   :  { %1686 = vrot.lane.b32.xlu1 %v1656_v34, %s3450_s27  ;;  %v2677_v34 = vld [vmem:[%s3425_s12 + $0x48] sm:$0xff]  }
0x1023   :  { %v1665_v40 = vpop.permute.xlu0 %1664 }
0x1024   :  { %1670 = vst.msk [vmem:[#allocation2] sm:$0xff] %vm700_vm4, %v1665_v40 }
0x1027   :  { %v1667_v41 = vpop.permute.xlu1 %1666 }
0x1028   :  { %1671 = vst.msk [vmem:[#allocation2 + $0x8] sm:$0xff] %vm700_vm4, %v1667_v41 }
0x1067   :  { %v1675_v43 = vpop.permute.xlu0 %1674 }
0x1068   :  { %1680 = vst.msk [vmem:[#allocation2] sm:$0xff] %vm711_vm5, %v1675_v43 }
0x106b   :  { %v1677_v44 = vpop.permute.xlu1 %1676  ;;  %v1685_v45 = vpop.permute.xlu0 %1684 }
0x106c   :  { %1681 = vst.msk [vmem:[#allocation2 + $0x8] sm:$0xff] %vm711_vm5, %v1677_v44 }
0x106d   :  { %1690 = vst.msk [vmem:[#allocation2] sm:$0xff] %vm722_vm6, %v1685_v45 }
0x106f   :  { %v1687_v46 = vpop.permute.xlu1 %1686 }
0x1070   :  { %1691 = vst.msk [vmem:[#allocation2 + $0x8] sm:$0xff] %vm722_vm6, %v1687_v46 }
0x1074   :  { %v1692_v47 = vld [vmem:[#allocation2] sm:$0xff] }
0x1077   :  { %v1693_v48 = vld [vmem:[#allocation2 + $0x8] sm:$0xff] }
0x1078   :  { %v1699_v51 = vpack.c.bf16 %v1693_v48, %v1692_v47 }
0x107a   :  { %2564 = vmatmul.mubr.msk.bf16.vlgmr.msra.gmra.mxu0 %vm70_vm0, %v1699_v51 }
0x107b   :  { %2591 = vmatprep.mubr.msk.bf16.mxu0 %vm2788_vm1, %v2787_v14  ;;  %2576 = vmatpush3.bf16.msra.mxu0 %v2671_v26 }
0x107c   :  { %2577 = vmatprep.subr.bf16.mxu0 %v2787_v14 }
0x107f   :  { %2578 = vmatpush3.bf16.msra.mxu0 %v2672_v50 }
0x1080   :  { %2579 = vmatprep.subr.bf16.mxu0 %v2787_v14 }
0x1083   :  { %2580 = vmatpush3.bf16.msra.mxu0 %v2673_v28  ;;  %v2327_v28 = vld [vmem:[%s3428_s14 + $0x1] ss:$0 sm:$0xff] }
0x1084   :  { %2581 = vmatprep.subr.bf16.mxu0 %v2787_v14 }
0x1087   :  { %2582 = vmatpush3.bf16.msra.mxu0 %v2674_v29 }
0x1088   :  { %2583 = vmatprep.subr.bf16.mxu0 %v2787_v14 }
0x108b   :  { %2584 = vmatpush3.bf16.msra.mxu0 %v2675_v30 }
0x108c   :  { %2585 = vmatprep.subr.bf16.mxu0 %v2787_v14 }
0x108f   :  { %2586 = vmatpush3.bf16.msra.mxu0 %v2676_v33 }
0x1090   :  { %2587 = vmatprep.subr.bf16.mxu0 %v2787_v14 }
0x1093   :  { %2588 = vmatpush3.bf16.msra.mxu0 %v2677_v34  ;;  %v2328_v34 = vld [vmem:[%s3429_s15 + $0x1] ss:$0 sm:$0xff] }
0x1094   :  { %2589 = vmatprep.subr.bf16.mxu0 %v2787_v14 }
0x1097   :  { %2590 = vmatpush3.bf16.msra.mxu0 %v2678_v31 }
0x113a   :  { %v1757_v52 = vpop.f32.mrf.mxu0 }
0x113b   :  { %v1758_v53 = vadd.f32 %v2282_v42, %v1757_v52 }
0x113c   :  { %v2565_v55 = vpop.f32.mrf.mxu0 }
0x113d   :  { %v1764_v49 = vadd.f32 %v1758_v53, %v3162_v6 }
0x113e   :  { %v1760_v25 = vpop.f32.mrf.mxu0 }
0x113f   :  { %v1761_v18 = vadd.f32 %v2282_v42, %v1760_v25  ;;  %v1770_v56 = vsel %vm70_vm0, %v1764_v49, 0.0 }
0x1140   :  { %1771 = vadd.xlane.f32.xlu0 %v1770_v56  ;;  %v2566_v57 = vpop.f32.mrf.mxu0 }
0x1141   :  { %v1765_v58 = vadd.f32 %v1761_v18, %v3164_v7  ;;  %v2669_v7 = vld [vmem:[%s3422_s10 + $0x18] sm:$0xff]  }
0x1142   :  { %2568 = vmatpush3.bf16.msra.mxu1 %v2669_v7 }
0x1143   :  { %v1773_v59 = vsel %vm70_vm0, %v1765_v58, 0.0  ;;  %2569 = vmatprep.subr.bf16.mxu1 %v2787_v14 }
0x1144   :  { %1774 = vadd.xlane.f32.xlu1 %v1773_v59 }
0x1146   :  { %2570 = vmatpush3.bf16.msra.mxu1 %v2670_v8 }
0x1147   :  { %2595 = vmatprep.subr.bf16.mxu1 %v2787_v14 }
0x11c9   :  { %v1772_v60 = vpop.xlane.xlu0 %1771 }
0x11ca   :  { %v1776_v61 = vmul.f32 0.03125, %v1772_v60  ;;  %v2316_v60 = vld [vmem:[%s3427_s13 + $0x1] ss:$0 sm:$0xff] }
0x11cc   :  { %v1778_v62 = vsub.f32 %v1764_v49, %v1776_v61 }
0x11cd   :  { %v1775_v0 = vpop.xlane.xlu1 %1774 }
0x11ce   :  { %v1777_v1 = vmul.f32 0.03125, %v1775_v0  ;;  %v1780_v27 = vmul.f32 %v1778_v62, %v1778_v62 }
0x11d0   :  { %v1779_v2 = vsub.f32 %v1765_v58, %v1777_v1  ;;  %v1782_v6 = vsel %vm70_vm0, %v1780_v27, 0.0 }
0x11d1   :  { %1783 = vadd.xlane.f32.xlu0 %v1782_v6 }
0x11d2   :  { %v1781_v4 = vmul.f32 %v1779_v2, %v1779_v2 }
0x11d4   :  { %v1785_v5 = vsel %vm70_vm0, %v1781_v4, 0.0 }
0x11d5   :  { %1786 = vadd.xlane.f32.xlu0 %v1785_v5 }
0x125a   :  { %v1784_v9 = vpop.xlane.xlu0 %1783 }
0x125b   :  { %v1788_v10 = vmul.f32 0.03125, %v1784_v9 }
0x125d   :  { %v1790_v63 = vadd.f32 1e-12, %v1788_v10 }
0x125e   :  { %v1787_v11 = vpop.xlane.xlu0 %1786 }
0x125f   :  { %2763 = vrsqrt.f32 %v1790_v63  ;;  %v1789_v12 = vmul.f32 0.03125, %v1787_v11 }
0x1261   :  { %v1791_v13 = vadd.f32 1e-12, %v1789_v12 }
0x1263   :  { %2765 = vrsqrt.f32 %v1791_v13 }
0x126c   :  { %v2764_v15 = vpop.eup %2763 }
0x126d   :  { %v1794_v16 = vmul.f32 %v2764_v15, %v1778_v62 }
0x126f   :  { %v1802_v20 = vmul.f32 %v2288_v17, %v1794_v16 }
0x1270   :  { %v2766_v3 = vpop.eup %2765 }
0x1271   :  { %v1795_v19 = vmul.f32 %v2766_v3, %v1779_v2  ;;  %v1810_v23 = vadd.f32 %v2289_v21, %v1802_v20  ;;  %v2679_v3 = vld [vmem:[%s3430_s16 + $0x8] sm:$0xff]  }
0x1273   :  { %v1803_v22 = vmul.f32 %v2288_v17, %v1795_v19  ;;  %v2680_v19 = vld [vmem:[%s3430_s16] sm:$0xff]  }
0x1275   :  { %v3329_v24 = vadd.f32 %v2289_v21, %v1803_v22 }
0x1277   :  { %v1817_v54 = vpack.c.bf16 %v3329_v24, %v1810_v23 }
0x1279   :  { %2572 = vmatmul.mubr.msk.bf16.vlgmr.msra.gmra.mxu1 %vm70_vm0, %v1817_v54 }
0x127a   :  { %2599 = vmatprep.mubr.msk.bf16.mxu1 %vm2788_vm1, %v2787_v14  ;;  %2596 = vmatpush3.bf16.msra.mxu1 %v2679_v3 }
0x127b   :  { %2597 = vmatprep.subr.bf16.mxu1 %v2787_v14 }
0x127e   :  { %2598 = vmatpush3.bf16.msra.mxu1 %v2680_v19 }
0x127f   :  { %2603 = vmatprep.subr.bf16.mxu1 %v2787_v14 }
0x1339   :  { %v1875_v36 = vpop.f32.mrf.mxu1 }
0x133a   :  { %v1876_v32 = vadd.f32 %v2295_v35, %v1875_v36 }
0x133b   :  { %v2573_v37 = vpop.f32.mrf.mxu1 }
0x133c   :  { %v1882_v38 = vmul.f32 %v1876_v32, %v1876_v32  ;;  %v2681_v37 = vld [vmem:[%s3431_s18 + $0x8] sm:$0xff]  }
0x133d   :  { %v1878_v39 = vpop.f32.mrf.mxu1 }
0x133e   :  { %v1884_v40 = vmul.f32 %v1882_v38, %v1876_v32  ;;  %v1879_v41 = vadd.f32 %v2295_v35, %v1878_v39  ;;  %v2682_v38 = vld [vmem:[%s3431_s18] sm:$0xff]  }
0x133f   :  { %v2574_v43 = vpop.f32.mrf.mxu1  ;;  %v2329_v39 = vld [vmem:[%s3432_s17] ss:$0 sm:$0xff] }
0x1340   :  { %v1886_v44 = vmul.f32 0.044715, %v1884_v40  ;;  %v1883_v45 = vmul.f32 %v1879_v41, %v1879_v41 }
0x1342   :  { %v1888_v46 = vadd.f32 %v1886_v44, %v1876_v32  ;;  %v1885_v47 = vmul.f32 %v1883_v45, %v1879_v41 }
0x1344   :  { %v1890_v48 = vmul.f32 0.7978846, %v1888_v46  ;;  %v1887_v51 = vmul.f32 0.044715, %v1885_v47 }
0x1346   :  { %2767 = vtanh.f32 %v1890_v48  ;;  %v1889_v42 = vadd.f32 %v1887_v51, %v1879_v41 }
0x1348   :  { %v1891_v52 = vmul.f32 0.7978846, %v1889_v42 }
0x134a   :  { %2769 = vtanh.f32 %v1891_v52 }
0x1353   :  { %v2768_v53 = vpop.eup %2767 }
0x1354   :  { %v1894_v55 = vadd.f32 1.0, %v2768_v53 }
0x1356   :  { %v1896_v25 = vmul.f32 0.5, %v1894_v55 }
0x1357   :  { %v2770_v49 = vpop.eup %2769 }
0x1358   :  { %v1895_v18 = vadd.f32 1.0, %v2770_v49  ;;  %v1898_v57 = vmul.f32 %v1896_v25, %v1876_v32 }
0x135a   :  { %v1897_v56 = vmul.f32 0.5, %v1895_v18 }
0x135c   :  { %v1899_v58 = vmul.f32 %v1897_v56, %v1879_v41 }
0x135e   :  { %v1917_v59 = vpack.c.bf16 %v1899_v58, %v1898_v57 }
0x1360   :  { %2592 = vmatmul.mubr.bf16.vlgmr.msra.gmra.mxu0 %v1917_v59 }
0x1420   :  { %v2008_v61 = vpop.f32.mrf.mxu0 }
0x1421   :  { %v2009_v62 = vadd.f32 %v2316_v60, %v2008_v61 }
0x1422   :  { %v2593_v0 = vpop.f32.mrf.mxu0 }
0x1423   :  { %v2015_v1 = vadd.f32 %v2009_v62, %v1810_v23 }
0x1424   :  { %v2011_v27 = vpop.f32.mrf.mxu0 }
0x1425   :  { %v2012_v2 = vadd.f32 %v2316_v60, %v2011_v27  ;;  %v2021_v6 = vsel %vm70_vm0, %v2015_v1, 0.0 }
0x1426   :  { %2022 = vadd.xlane.f32.xlu0 %v2021_v6  ;;  %v2594_v4 = vpop.f32.mrf.mxu0 }
0x1427   :  { %v2016_v5 = vadd.f32 %v2012_v2, %v3329_v24 }
0x1429   :  { %v2024_v7 = vsel %vm70_vm0, %v2016_v5, 0.0 }
0x142a   :  { %2025 = vadd.xlane.f32.xlu1 %v2024_v7 }
0x14af   :  { %v2023_v8 = vpop.xlane.xlu0 %2022 }
0x14b0   :  { %v2027_v9 = vmul.f32 0.03125, %v2023_v8 }
0x14b2   :  { %v2029_v10 = vsub.f32 %v2015_v1, %v2027_v9 }
0x14b3   :  { %v2026_v63 = vpop.xlane.xlu1 %2025 }
0x14b4   :  { %v2028_v11 = vmul.f32 0.03125, %v2026_v63  ;;  %v2031_v12 = vmul.f32 %v2029_v10, %v2029_v10 }
0x14b6   :  { %v2030_v13 = vsub.f32 %v2016_v5, %v2028_v11  ;;  %v2033_v15 = vsel %vm70_vm0, %v2031_v12, 0.0 }
0x14b7   :  { %2034 = vadd.xlane.f32.xlu0 %v2033_v15 }
0x14b8   :  { %v2032_v16 = vmul.f32 %v2030_v13, %v2030_v13 }
0x14ba   :  { %v2036_v17 = vsel %vm70_vm0, %v2032_v16, 0.0 }
0x14bb   :  { %2037 = vadd.xlane.f32.xlu1 %v2036_v17 }
0x1540   :  { %v2035_v20 = vpop.xlane.xlu0 %2034 }
0x1541   :  { %v2039_v21 = vmul.f32 0.03125, %v2035_v20 }
0x1543   :  { %v2041_v22 = vadd.f32 1e-12, %v2039_v21 }
0x1544   :  { %v2038_v23 = vpop.xlane.xlu1 %2037 }
0x1545   :  { %2771 = vrsqrt.f32 %v2041_v22  ;;  %v2040_v24 = vmul.f32 0.03125, %v2038_v23 }
0x1547   :  { %v2042_v54 = vadd.f32 1e-12, %v2040_v24 }
0x1549   :  { %2773 = vrsqrt.f32 %v2042_v54 }
0x1552   :  { %v2772_v26 = vpop.eup %2771 }
0x1553   :  { %v2045_v50 = vmul.f32 %v2772_v26, %v2029_v10 }
0x1555   :  { %v2053_v33 = vmul.f32 %v2327_v28, %v2045_v50 }
0x1556   :  { %v2774_v29 = vpop.eup %2773 }
0x1557   :  { %v2046_v30 = vmul.f32 %v2774_v29, %v2030_v13  ;;  %v2061_v35 = vadd.f32 %v2328_v34, %v2053_v33 }
0x1559   :  { %v2054_v31 = vmul.f32 %v2327_v28, %v2046_v30 }
0x155b   :  { %v2062_v36 = vadd.f32 %v2328_v34, %v2054_v31 }
0x155d   :  { %v2067_v32 = vpack.c.bf16 %v2062_v36, %v2061_v35 }
0x155f   :  { %2600 = vmatmul.mubr.msk.bf16.vlgmr.msra.gmra.mxu1 %vm70_vm0, %v2067_v32 }
0x1560   :  { %2607 = vmatprep.mubr.msk.bf16.mxu1 %vm2788_vm1, %v2787_v14  ;;  %2604 = vmatpush3.bf16.msra.mxu1 %v2681_v37 }
0x1561   :  { %2605 = vmatprep.subr.bf16.mxu1 %v2787_v14  ;;  %v2333_v14 = vld [vmem:[%s3433_s19] ss:$0 sm:$0xff] }
0x1564   :  { %2606 = vmatpush3.bf16.msra.mxu1 %v2682_v38 }
0x161f   :  { %v2124_v40 = vpop.f32.mrf.mxu1 }
0x1620   :  { %v2125_v41 = vadd.f32 %v2329_v39, %v2124_v40 }
0x1621   :  { %v2601_v43 = vpop.f32.mrf.mxu1 }
0x1622   :  { %2775 = vtanh.f32 %v2125_v41 }
0x1623   :  { %v2127_v44 = vpop.f32.mrf.mxu1 }
0x1624   :  { %v2128_v45 = vadd.f32 %v2329_v39, %v2127_v44 }
0x1625   :  { %v2602_v46 = vpop.f32.mrf.mxu1 }
0x1626   :  { %2777 = vtanh.f32 %v2128_v45 }
0x162f   :  { %v2776_v47 = vpop.eup %2775 }
0x1633   :  { %v2778_v48 = vpop.eup %2777 }
0x1634   :  { %v2137_v51 = vpack.c.bf16 %v2778_v48, %v2776_v47 }
0x1636   :  { %2608 = vmatmul.mubr.msk.bf16.vlgmr.msra.gmra.mxu1 %vm70_vm0, %v2137_v51 }
0x16f6   :  { %v2194_v42 = vpop.f32.mrf.mxu1 }
0x16f7   :  { %v2195_v52 = vadd.f32 %v2333_v14, %v2194_v42 }
0x16f8   :  { %v2609_v53 = vpop.f32.mrf.mxu1 }
0x16f9   :  { %2201 = vmax.xlane.f32.xlu0 %v2195_v52 }
0x16fa   :  { %v2197_v55 = vpop.f32.mrf.mxu1 }
0x16fb   :  { %v2198_v49 = vadd.f32 %v2333_v14, %v2197_v55 }
0x16fc   :  { %v2610_v25 = vpop.f32.mrf.mxu1 }
0x16fd   :  { %2203 = vmax.xlane.f32.xlu1 %v2198_v49 }
0x1782   :  { %v2202_v18 = vpop.xlane.xlu0 %2201 }
0x1783   :  { %v2205_v56 = vsub.f32 %v2195_v52, %v2202_v18 }
0x1785   :  { %v2207_v57 = vmul.f32 1.442695, %v2205_v56 }
0x1786   :  { %v2204_v58 = vpop.xlane.xlu1 %2203 }
0x1787   :  { %2779 = vpow2.f32 %v2207_v57  ;;  %v2206_v59 = vsub.f32 %v2198_v49, %v2204_v58 }
0x1789   :  { %v2209_v60 = vmul.f32 1.442695, %v2206_v59 }
0x178b   :  { %2781 = vpow2.f32 %v2209_v60 }
0x1794   :  { %v2780_v61 = vpop.eup %2779 }
0x1795   :  { %2211 = vadd.xlane.f32.xlu0 %v2780_v61 }
0x1798   :  { %v2782_v62 = vpop.eup %2781 }
0x1799   :  { %2213 = vadd.xlane.f32.xlu1 %v2782_v62 }
0x181e   :  { %v2212_v0 = vpop.xlane.xlu0 %2211 }
0x181f   :  { %2783 = vrcp.f32 %v2212_v0 }
0x1822   :  { %v2214_v1 = vpop.xlane.xlu1 %2213 }
0x1823   :  { %2785 = vrcp.f32 %v2214_v1 }
0x182c   :  { %v2784_v27 = vpop.eup %2783 }
0x182d   :  { %v2216_v2 = vmul.f32 %v2784_v27, %v2780_v61 }
0x182f   :  { %2219 = vst [vmem:[%s3434_s20] sm:$0xff] %v2216_v2 }
0x1830   :  { %v2786_v6 = vpop.eup %2785 }
0x1831   :  { %v2218_v4 = vmul.f32 %v2786_v6, %v2782_v62 }
0x1833   :  { %2220 = vst [vmem:[%s3434_s20 + $0x8] sm:$0xff] %v2218_v4 }

</bundles_post_ra>
